<compile_context>
chip_gen: v7x
topology: tpu7x:2x2x1
jax: 0.10.0
libtpu: 0.0.40
codegen_flags: <defaults>
</compile_context>

<pallas_src>
import math
from functools import partial

import jax
import jax.numpy as jnp
from jax import lax
from jax.experimental import pallas as pl
from jax.experimental.pallas import tpu as pltpu

_HIGHEST = jax.lax.Precision.HIGHEST


def _attention_kernel(asp_ref, inp_ref, wT_ref, b_ref, rep_ref, score_ref,
                      *, num_aspects):
    # asp_ref   : (bt*A, P)   aspects for this batch block (flattened in XLA)
    # inp_ref   : (bt, T, H)  inputs for this batch block
    # wT_ref    : (P, H)      w_q weight, pre-transposed once in the wrapper
    # b_ref     : (1, H)      w_q bias
    # rep_ref   : (bt, H)     output representations block
    # score_ref : (bt, A, T)  output attention scores block (lane dim = T)
    A = num_aspects
    bt, T, H = inp_ref.shape
    f32 = jnp.float32

    asp = asp_ref[...].astype(f32)                     # (bt*A, P)
    inp = inp_ref[...].astype(f32)                     # (bt, T, H)
    w_t = wT_ref[...].astype(f32)                      # (P, H)
    bias = b_ref[...].astype(f32)                      # (1, H)

    # Fused projection across the whole batch block: one MXU matmul.
    aspects_x = jnp.dot(asp, w_t, precision=_HIGHEST,
                        preferred_element_type=f32) + bias        # (bt*A, H)
    aspects_x = aspects_x.reshape(bt, A, H)

    # logits[b, a, t] = sum_h aspects_x[b, a, h] * inputs[b, t, h]
    logits = lax.dot_general(
        aspects_x, inp,
        dimension_numbers=(((2,), (2,)), ((0,), (0,))),
        precision=_HIGHEST, preferred_element_type=f32)           # (bt, A, T)

    # Numerically stable softmax over timesteps; exact divide (HBM-bound
    # kernel => the divide is free, and `score` is a user-facing output).
    m = jnp.max(logits, axis=-1, keepdims=True)
    e = jnp.exp(logits - m)
    score = e / jnp.sum(e, axis=-1, keepdims=True)                # (bt, A, T)

    # weighted[b, a, h] = sum_t score[b, a, t] * inputs[b, t, h]
    weighted = lax.dot_general(
        score, inp,
        dimension_numbers=(((2,), (1,)), ((0,), (0,))),
        precision=_HIGHEST, preferred_element_type=f32)           # (bt, A, H)
    rep = jnp.sum(weighted, axis=1)                               # (bt, H)

    rep_ref[...] = rep.astype(rep_ref.dtype)
    score_ref[...] = score.astype(score_ref.dtype)


def _valid_batch_blocks(B):
    # bt must keep every BlockSpec legal: the (bt, H) representations block
    # needs its second-to-last dim divisible by 8 (sublanes) or equal to B.
    return sorted(d for d in range(1, B + 1)
                  if B % d == 0 and (d % 8 == 0 or d == B))


def _pick_block_b(B, A, T, H, P, itemsize,
                  vmem_budget_bytes=24 * 1024 * 1024,
                  target_inputs_bytes=4 * 1024 * 1024):
    """Pick the batch block from HBM-streaming math.

    Each grid step should stream ~2-4 MiB of `inputs` so the ~0.35us/step
    pipeline overhead is amortized, while the double-buffered working set
    stays under a budget that fits every generation's scoped VMEM
    (v5e 16 MiB default raised to 32 MiB; v7x 64 MiB physical / 32 MiB scoped).
    Only divisors of B are considered, so no padding copy of `inputs` is ever
    materialized in the wrapper.
    """
    def working_set(bt):
        a_pad = max(A, 8)  # A < 8 pads to 8 sublanes in the 3-D intermediates
        streamed = bt * (T * H + A * P + H + A * T) * itemsize    # pipelined blocks
        scratch = bt * a_pad * (3 * T + 2 * H) * 4                # f32 logits/e/score + aspects_x/weighted (rough)
        consts = (P * H + H) * itemsize                           # weight + bias
        return 2 * streamed + scratch + 2 * consts                # x2: double buffering

    candidates = _valid_batch_blocks(B)
    feasible = [d for d in candidates if working_set(d) <= vmem_budget_bytes]
    if not feasible:
        return candidates[0]
    for d in feasible:
        if d * T * H * itemsize >= target_inputs_bytes:
            return d        # smallest block that already streams ~target bytes/step
    return feasible[-1]     # small problem: biggest feasible block (often whole B)


@partial(jax.jit, static_argnames=("block_b", "out_dtype"))
def attention_modified_forward(inputs, aspects, w_q_weight, w_q_bias,
                               input_lengths=None, *, block_b=None,
                               out_dtype=None):
    """inputs: (B, T, H), aspects: (B, A, P), w_q_weight: (H, P), w_q_bias: (H,).

    Returns (representations (B, H), score (B, A, T)).
    input_lengths is accepted for API parity with the PyTorch module but is
    unused (the PyTorch forward never masks with it).
    """
    del input_lengths  # unused, matches PyTorch forward
    B, T, H = inputs.shape
    B2, A, P = aspects.shape
    if B2 != B:
        raise ValueError("batch mismatch between inputs and aspects")
    out_dtype = inputs.dtype if out_dtype is None else jnp.dtype(out_dtype)

    itemsize = jnp.dtype(inputs.dtype).itemsize
    if block_b is None:
        bt = _pick_block_b(B, A, T, H, P, itemsize)
    else:
        candidates = _valid_batch_blocks(B)
        smaller = [d for d in candidates if d <= block_b]
        bt = smaller[-1] if smaller else candidates[0]
    n_blocks = B // bt

    # Loop-invariant layout work done once in XLA, not per grid step.
    w_t = w_q_weight.T                       # (P, H)
    bias2d = w_q_bias.reshape(1, H)          # (1, H)
    aspects_flat = aspects.reshape(B * A, P)  # contiguous reshape, no copy

    grid_spec = pltpu.PrefetchScalarGridSpec(
        num_scalar_prefetch=0,
        grid=(n_blocks,),
        in_specs=[
            pl.BlockSpec((bt * A, P), lambda b: (b, 0)),      # aspects (flattened)
            pl.BlockSpec((bt, T, H), lambda b: (b, 0, 0)),    # inputs
            pl.BlockSpec((P, H), lambda b: (0, 0)),           # w_q weight (pre-transposed)
            pl.BlockSpec((1, H), lambda b: (0, 0)),           # w_q bias
        ],
        out_specs=[
            pl.BlockSpec((bt, H), lambda b: (b, 0)),          # representations
            pl.BlockSpec((bt, A, T), lambda b: (b, 0, 0)),    # score (3-D, lane dim = T)
        ],
    )

    rep, score = pl.pallas_call(
        partial(_attention_kernel, num_aspects=A),
        out_shape=(
            jax.ShapeDtypeStruct((B, H), out_dtype),
            jax.ShapeDtypeStruct((B, A, T), out_dtype),
        ),
        grid_spec=grid_spec,
        compiler_params=pltpu.CompilerParams(
            dimension_semantics=("parallel",),   # batch axis shards across TCs (v7x)
            vmem_limit_bytes=32 * 1024 * 1024,   # raise v5e's 16 MiB default, fits v7x
        ),
    )(aspects_flat, inputs, w_t, bias2d)
    return rep, score


def reference_forward(inputs, aspects, w_q_weight, w_q_bias):
    """Pure-JAX reference mirroring the PyTorch forward (full f32 precision)."""
    hp = jax.lax.Precision.HIGHEST
    aspects_x = jnp.einsum("bap,hp->bah", aspects, w_q_weight, precision=hp) + w_q_bias
    logits = jnp.einsum("bah,bth->bat", aspects_x, inputs, precision=hp)
    score = jax.nn.softmax(logits, axis=-1)
    weighted = jnp.einsum("bat,bth->bah", score, inputs, precision=hp)
    representations = weighted.sum(axis=1)
    return representations, score


if __name__ == "__main__":
    # Small, self-consistent shapes.
    B = 16          # batch
    T = 8           # sequence length (timesteps)
    H = 32          # dim_sen (hidden size of inputs)
    P = 16          # dim_profile (aspect feature dim)
    A = 4           # number of aspects per example
    attention_size = H  # attention_vector is unused in forward; only sets stdv

    key = jax.random.PRNGKey(0)
    k_in, k_asp, k_w, k_b = jax.random.split(key, 4)

    # Parameter init matching reset_parameters(): uniform(-stdv, stdv),
    # stdv = 1/sqrt(attention_size).
    stdv = 1.0 / math.sqrt(attention_size)
    w_q_weight = jax.random.uniform(k_w, (H, P), jnp.float32, -stdv, stdv)
    w_q_bias = jax.random.uniform(k_b, (H,), jnp.float32, -stdv, stdv)

    inputs = jax.random.normal(k_in, (B, T, H), jnp.float32)
    aspects = jax.random.normal(k_asp, (B, A, P), jnp.float32)
    input_lengths = jnp.full((B,), T, jnp.int32)   # accepted but unused (matches PyTorch)

    rep_ref, score_ref = reference_forward(inputs, aspects, w_q_weight, w_q_bias)

    # Default path: auto block size (whole batch in one grid step at toy shapes).
    rep, score = attention_modified_forward(inputs, aspects, w_q_weight, w_q_bias,
                                            input_lengths)
    jax.block_until_ready((rep, score))
    assert rep.shape == (B, H) and score.shape == (B, A, T)
    assert jnp.allclose(rep, rep_ref, atol=1e-3, rtol=1e-3)
    assert jnp.allclose(score, score_ref, atol=1e-3, rtol=1e-3)

    # Also exercise the multi-block grid path (2 grid steps of bt=8).
    rep2, score2 = attention_modified_forward(inputs, aspects, w_q_weight, w_q_bias,
                                              input_lengths, block_b=8)
    jax.block_until_ready((rep2, score2))
    assert jnp.allclose(rep2, rep_ref, atol=1e-3, rtol=1e-3)
    assert jnp.allclose(score2, score_ref, atol=1e-3, rtol=1e-3)

    print("KERNEL_OK")
</pallas_src>

<mosaic_0001>
module attributes {stable_mosaic.version = 11 : i64} {
  func.func @_attention_kernel(%arg0: i32, %arg1: memref<64x16xf32, #tpu.memory_space<vmem>>, %arg2: memref<16x8x32xf32, #tpu.memory_space<vmem>>, %arg3: memref<16x32xf32, #tpu.memory_space<vmem>>, %arg4: memref<1x32xf32, #tpu.memory_space<vmem>>, %arg5: memref<16x32xf32, #tpu.memory_space<vmem>>, %arg6: memref<16x4x8xf32, #tpu.memory_space<vmem>>) attributes {dimension_semantics = [#tpu.dimension_semantics<parallel>], iteration_bounds = array<i64: 1>, scalar_prefetch = 0 : i64, scratch_operands = 0 : i64, tpu.core_type = #tpu.core_type<tc>, window_params = [{transform_indices = @transform_0, window_bounds = array<i64: 64, 16>}, {transform_indices = @transform_1, window_bounds = array<i64: 16, 8, 32>}, {pipeline_mode = #tpu.pipeline_mode<synchronous>, transform_indices = @transform_2, window_bounds = array<i64: 16, 32>}, {pipeline_mode = #tpu.pipeline_mode<synchronous>, transform_indices = @transform_3, window_bounds = array<i64: 1, 32>}, {transform_indices = @transform_4, window_bounds = array<i64: 16, 32>}, {transform_indices = @transform_5, window_bounds = array<i64: 16, 4, 8>}]} {
    %c0 = arith.constant 0 : index
    %c0_0 = arith.constant 0 : index
    %0 = vector.load %arg1[%c0, %c0_0] : memref<64x16xf32, #tpu.memory_space<vmem>>, vector<64x16xf32>
    %c0_1 = arith.constant 0 : index
    %c0_2 = arith.constant 0 : index
    %c0_3 = arith.constant 0 : index
    %1 = vector.load %arg2[%c0_1, %c0_2, %c0_3] : memref<16x8x32xf32, #tpu.memory_space<vmem>>, vector<16x8x32xf32>
    %c0_4 = arith.constant 0 : index
    %c0_5 = arith.constant 0 : index
    %2 = vector.load %arg3[%c0_4, %c0_5] : memref<16x32xf32, #tpu.memory_space<vmem>>, vector<16x32xf32>
    %c0_6 = arith.constant 0 : index
    %c0_7 = arith.constant 0 : index
    %3 = vector.load %arg4[%c0_6, %c0_7] : memref<1x32xf32, #tpu.memory_space<vmem>>, vector<1x32xf32>
    %cst = arith.constant dense<0.000000e+00> : vector<64x32xf32>
    %4 = tpu.matmul %0, %2, %cst {dimension_numbers = #tpu.dot_dimension_numbers<[1], [0], [0], [1], [0, 0, 1, 1], [], []>, precision = #tpu.contract_precision<fp32>} : vector<64x16xf32>, vector<16x32xf32>, vector<64x32xf32> -> vector<64x32xf32>
    %5 = vector.broadcast %3 : vector<1x32xf32> to vector<64x32xf32>
    %6 = arith.addf %4, %5 : vector<64x32xf32>
    %7 = vector.shape_cast %6 : vector<64x32xf32> to vector<16x4x32xf32>
    %cst_8 = arith.constant dense<0.000000e+00> : vector<16x4x8xf32>
    %8 = tpu.matmul %7, %1, %cst_8 {dimension_numbers = #tpu.dot_dimension_numbers<[2], [2], [1], [1], [0, 0, 0, 1, 1, 1], [0], [0]>, precision = #tpu.contract_precision<fp32>} : vector<16x4x32xf32>, vector<16x8x32xf32>, vector<16x4x8xf32> -> vector<16x4x8xf32>
    %cst_9 = arith.constant dense<0xFF800000> : vector<16x4xf32>
    %9 = vector.multi_reduction <maximumf>, %8, %cst_9 [2] : vector<16x4x8xf32> to vector<16x4xf32>
    %10 = vector.shape_cast %9 : vector<16x4xf32> to vector<16x4x1xf32>
    %11 = vector.broadcast %10 : vector<16x4x1xf32> to vector<16x4x8xf32>
    %12 = arith.subf %8, %11 : vector<16x4x8xf32>
    %13 = math.exp %12 : vector<16x4x8xf32>
    %cst_10 = arith.constant dense<0.000000e+00> : vector<16x4xf32>
    %14 = vector.multi_reduction <add>, %13, %cst_10 [2] : vector<16x4x8xf32> to vector<16x4xf32>
    %15 = vector.shape_cast %14 : vector<16x4xf32> to vector<16x4x1xf32>
    %16 = vector.broadcast %15 : vector<16x4x1xf32> to vector<16x4x8xf32>
    %17 = arith.divf %13, %16 : vector<16x4x8xf32>
    %cst_11 = arith.constant dense<0.000000e+00> : vector<16x4x32xf32>
    %18 = tpu.matmul %17, %1, %cst_11 {dimension_numbers = #tpu.dot_dimension_numbers<[2], [1], [1], [2], [0, 0, 0, 1, 1, 2], [0], [0]>, precision = #tpu.contract_precision<fp32>} : vector<16x4x8xf32>, vector<16x8x32xf32>, vector<16x4x32xf32> -> vector<16x4x32xf32>
    %cst_12 = arith.constant dense<0.000000e+00> : vector<16x32xf32>
    %19 = vector.multi_reduction <add>, %18, %cst_12 [1] : vector<16x4x32xf32> to vector<16x32xf32>
    %c0_13 = arith.constant 0 : index
    %c0_14 = arith.constant 0 : index
    %20 = vector.load %arg5[%c0_13, %c0_14] : memref<16x32xf32, #tpu.memory_space<vmem>>, vector<16x32xf32>
    tpu.vector_store %arg5[%c0_13, %c0_14], %19 {strides = array<i32>} : memref<16x32xf32, #tpu.memory_space<vmem>>, vector<16x32xf32>,
    %c0_15 = arith.constant 0 : index
    %c0_16 = arith.constant 0 : index
    %c0_17 = arith.constant 0 : index
    %21 = vector.load %arg6[%c0_15, %c0_16, %c0_17] : memref<16x4x8xf32, #tpu.memory_space<vmem>>, vector<16x4x8xf32>
    tpu.vector_store %arg6[%c0_15, %c0_16, %c0_17], %17 {strides = array<i32>} : memref<16x4x8xf32, #tpu.memory_space<vmem>>, vector<16x4x8xf32>,
    return
  }
  func.func @transform_0(%arg0: i32) -> (i32, i32) {
    %c0_i32 = arith.constant 0 : i32
    %c0_i32_0 = arith.constant 0 : i32
    return %arg0, %c0_i32 : i32, i32
  }
  func.func @transform_1(%arg0: i32) -> (i32, i32, i32) {
    %c0_i32 = arith.constant 0 : i32
    %c0_i32_0 = arith.constant 0 : i32
    %c0_i32_1 = arith.constant 0 : i32
    return %arg0, %c0_i32, %c0_i32_0 : i32, i32, i32
  }
  func.func @transform_2(%arg0: i32) -> (i32, i32) {
    %c0_i32 = arith.constant 0 : i32
    %c0_i32_0 = arith.constant 0 : i32
    %c0_i32_1 = arith.constant 0 : i32
    return %c0_i32, %c0_i32_0 : i32, i32
  }
  func.func @transform_3(%arg0: i32) -> (i32, i32) {
    %c0_i32 = arith.constant 0 : i32
    %c0_i32_0 = arith.constant 0 : i32
    %c0_i32_1 = arith.constant 0 : i32
    return %c0_i32, %c0_i32_0 : i32, i32
  }
  func.func @transform_4(%arg0: i32) -> (i32, i32) {
    %c0_i32 = arith.constant 0 : i32
    %c0_i32_0 = arith.constant 0 : i32
    return %arg0, %c0_i32 : i32, i32
  }
  func.func @transform_5(%arg0: i32) -> (i32, i32, i32) {
    %c0_i32 = arith.constant 0 : i32
    %c0_i32_0 = arith.constant 0 : i32
    %c0_i32_1 = arith.constant 0 : i32
    return %arg0, %c0_i32, %c0_i32_0 : i32, i32, i32
  }
}

</mosaic_0001>

<bundles_post_ra>
// kernel: attention_modified_forward.1
= control target key start
LH: loop header
LB: loop body
LE: loop exit
PB: predicated region body
PF: predicated region fallthrough
CT: control target
= control target key end

     0   :  { %11 = vsyncpa [#allocation3], 0  ;;  %s19340_s0 = inlined_call_operand.hbm [shape: f32[64,16], index: 0, kind: input, shape index: {}]   ;;  %s19341_s1 = inlined_call_operand.hbm [shape: f32[16,8,32], index: 1, kind: input, shape index: {}]   ;;  %s19342_s2 = inlined_call_operand.vmem [shape: f32[16,32], index: 2, kind: input, shape index: {}]   ;;  %s19343_s3 = inlined_call_operand.vmem [shape: f32[1,32], index: 3, kind: input, shape index: {}]   ;;  %s19344_s4 = inlined_call_operand.hbm [shape: f32[16,32], index: 4, kind: output, shape index: {0}]   ;;  %s19345_s5 = inlined_call_operand.vmem [shape: f32[16,4,8], index: 5, kind: output, shape index: {1}]  }
   0x1   :  { %12 = vsyncpa [#allocation6], 0 }
   0x2   :  { %13 = vsyncpa [#allocation4], 0  ;;  %s17705_s18 = smov [#allocation2]   ;;  %s17633_s22 = scalar_lea.hbm %s19340_s0, 1024 }
   0x3   :  { %s19_s19 = sshll.u32 %s17705_s18, 4  ;;  %p17634_p0 = scmp.ne.s32.totalorder %s19340_s0, %s17633_s22  ;;  %s20_s19 = int_to_ptr.vmem [resolvable:$true] %s19_s19 }
   0x4   :  { %p17637_p1 = scmp.lt.u32.totalorder %s17633_s22, %s19340_s0 }
   0x6   :  { %p17639_p2 = pnand %p17637_p1, %p17634_p0 }
   0x8   :  { %17642 = shalt.err (!%p17639_p2)
}
   0x9   :  { %s17643_s27 = scalar_lea.vmem %s20_s19, 1024  ;;  %p17648_p4 = scmp.lt.s32.totalorder %s20_s19, %s20_s19 }
   0xa   :  { %p17644_p3 = scmp.ne.s32.totalorder %s20_s19, %s17643_s27  ;;  %p17649_p5 = scmp.lt.s32.totalorder %s17643_s27, %s17643_s27 }
   0xc   :  { %p17650_p6 = por %p17649_p5, %p17648_p4 }
   0xe   :  { %p17651_p7 = pnand %p17650_p6, %p17644_p3 }
  0x10   :  { %17654 = shalt.err (!%p17651_p7)
}
  0x11   :  { %s17706_s28 = smov 128   ;;  %s17707_s29 = smov 8  }
  0x12   :  { %25 = dma.hbm_to_vmem [thread:$0]  %s19340_s0, 1024, %s20_s19, [#allocation3], %s17706_s28, %s17706_s28, %s17707_s29  }
  0x13   :  { %s17708_s7 = smov [#allocation5]   ;;  %s17655_s11 = scalar_lea.hbm %s19341_s1, 2048 }
  0x14   :  { %s31_s8 = sshll.u32 %s17708_s7, 4  ;;  %p17656_p8 = scmp.ne.s32.totalorder %s19341_s1, %s17655_s11  ;;  %s32_s8 = int_to_ptr.vmem [resolvable:$true] %s31_s8 }
  0x15   :  { %p17659_p9 = scmp.lt.u32.totalorder %s17655_s11, %s19341_s1 }
  0x17   :  { %p17661_p10 = pnand %p17659_p9, %p17656_p8 }
  0x19   :  { %17664 = shalt.err (!%p17661_p10)
}
  0x1a   :  { %s17665_s16 = scalar_lea.vmem %s32_s8, 2048  ;;  %p17670_p12 = scmp.lt.s32.totalorder %s32_s8, %s32_s8 }
  0x1b   :  { %p17666_p11 = scmp.ne.s32.totalorder %s32_s8, %s17665_s16  ;;  %p17671_p13 = scmp.lt.s32.totalorder %s17665_s16, %s17665_s16 }
  0x1d   :  { %p17672_p0 = por %p17671_p13, %p17670_p12 }
  0x1f   :  { %p17673_p1 = pnand %p17672_p0, %p17666_p11 }
  0x21   :  { %17676 = shalt.err (!%p17673_p1)
}
  0x22   :  { %37 = dma.hbm_to_vmem [thread:$0]  %s19341_s1, 2048, %s32_s8, [#allocation6], %s17706_s28, %s17706_s28, %s17707_s29  }
  0x23   :  { %17699 = dma.done.wait [#allocation3], 1024  }
  0x24   :  { %17700 = vsyncadd [#allocation3], 4294966272 }
  0x25   :  { %17701 = dma.done.wait [#allocation6], 2048  }
  0x26   :  { %17702 = vsyncadd [#allocation6], 4294965248  ;;  %vm81_vm0 = vcmask 130048   ;;  %v72_v0 = vld [vmem:[%s19342_s2] sm:$0xff]  ;;  %v73_v1 = vld [vmem:[%s19342_s2 + $0x8] sm:$0xff]  ;;  %vm882_vm1 = vcmask 261120  }
  0x27   :  { %v48_v2 = vld [vmem:[#allocation2] sm:$0xff]  ;;  %v107_v3 = vand.u32 4294901760, %v72_v0  ;;  %v110_v4 = vand.u32 4294901760, %v73_v1  ;;  %v49_v6 = vld [vmem:[#allocation2 + $0x8] sm:$0xff]  ;;  %v50_v7 = vld [vmem:[#allocation2 + $0x10] sm:$0xff]  ;;  %vm17710_vm2 = vmmov 0  }
  0x28   :  { %v83_v5 = vsel %vm81_vm0, %v48_v2, 0  ;;  %v51_v8 = vld [vmem:[#allocation2 + $0x18] sm:$0xff]  ;;  %v86_v10 = vsel %vm81_vm0, %v49_v6, 0  ;;  %v89_v11 = vsel %vm81_vm0, %v50_v7, 0  ;;  %v52_v13 = vld [vmem:[#allocation2 + $0x20] sm:$0xff]  ;;  %v53_v18 = vld [vmem:[#allocation2 + $0x28] sm:$0xff] }
  0x29   :  { %v17779_v9 = vand.u32 4294901760, %v83_v5  ;;  %v92_v12 = vsel %vm81_vm0, %v51_v8, 0  ;;  %v17784_v14 = vpack.c.bf16 %v110_v4, %v107_v3  ;;  %v17786_v15 = vand.u32 4294901760, %v86_v10  ;;  %v54_v39 = vld [vmem:[#allocation2 + $0x30] sm:$0xff]  ;;  %v55_v48 = vld [vmem:[#allocation2 + $0x38] sm:$0xff]  ;;  %v56_v8 = vld [vmem:[#allocation5] sm:$0xff] }
  0x2a   :  { %v17788_v16 = vsub.f32 %v72_v0, %v107_v3  ;;  %v17790_v17 = vsub.f32 %v73_v1, %v110_v4  ;;  %v17795_v20 = vand.u32 4294901760, %v89_v11  ;;  %v17797_v21 = vand.u32 4294901760, %v92_v12 }
  0x2b   :  { %v17793_v19 = vsub.f32 %v83_v5, %v17779_v9  ;;  %v95_v22 = vsel %vm81_vm0, %v52_v13, 0  ;;  %17155 = vmatprep.subr.bf16.mxu0 %v17784_v14  ;;  %v17802_v23 = vsub.f32 %v86_v10, %v17786_v15  ;;  %v98_v30 = vsel %vm81_vm0, %v53_v18, 0 }
  0x2c   :  { %v256_v24 = vand.u32 4294901760, %v17788_v16  ;;  %v263_v25 = vand.u32 4294901760, %v17790_v17  ;;  %v17806_v26 = vand.u32 4294901760, %v95_v22  ;;  %17157 = vmatpush3.bf16.msra.mxu0 %v17784_v14  ;;  %v17811_v28 = vsub.f32 %v89_v11, %v17795_v20 }
  0x2d   :  { %v175_v27 = vand.u32 4294901760, %v17793_v19  ;;  %v17814_v29 = vsub.f32 %v92_v12, %v17797_v21  ;;  %v185_v31 = vand.u32 4294901760, %v17802_v23  ;;  %v17832_v38 = vand.u32 4294901760, %v98_v30  ;;  %v60_v12 = vld [vmem:[#allocation5 + $0x20] sm:$0xff] }
  0x2e   :  { %v257_v32 = vsub.f32 %v17788_v16, %v256_v24  ;;  %v264_v33 = vsub.f32 %v17790_v17, %v263_v25  ;;  %v17825_v34 = vsub.f32 %v95_v22, %v17806_v26  ;;  %v195_v36 = vand.u32 4294901760, %v17811_v28 }
  0x2f   :  { %v176_v35 = vsub.f32 %v17793_v19, %v175_v27  ;;  %v205_v37 = vand.u32 4294901760, %v17814_v29  ;;  %v186_v40 = vsub.f32 %v17802_v23, %v185_v31  ;;  %v17845_v47 = vsub.f32 %v98_v30, %v17832_v38 }
  0x30   :  { %v258_v41 = vand.u32 4294901760, %v257_v32  ;;  %v265_v42 = vand.u32 4294901760, %v264_v33  ;;  %v215_v43 = vand.u32 4294901760, %v17825_v34  ;;  %v196_v45 = vsub.f32 %v17811_v28, %v195_v36 }
  0x31   :  { %v177_v44 = vand.u32 4294901760, %v176_v35  ;;  %v206_v46 = vsub.f32 %v17814_v29, %v205_v37  ;;  %v187_v49 = vand.u32 4294901760, %v186_v40  ;;  %v101_v52 = vsel %vm81_vm0, %v54_v39, 0 }
  0x32   :  { %v17158_v50 = vpack.c.bf16 %v265_v42, %v258_v41  ;;  %v216_v51 = vsub.f32 %v17825_v34, %v215_v43  ;;  %v197_v53 = vand.u32 4294901760, %v196_v45  ;;  %v225_v54 = vand.u32 4294901760, %v17845_v47 }
  0x33   :  { %16102 = vmatprep.mubr.f32.mxu0 %v177_v44  ;;  %v17852_v55 = vand.u32 4294901760, %v101_v52  ;;  %v207_v56 = vand.u32 4294901760, %v206_v46  ;;  %v104_v57 = vsel %vm81_vm0, %v55_v48, 0  ;;  %v17162_v58 = vpack.c.bf16 %v17790_v17, %v17788_v16 }
  0x34   :  { %16103 = vmatmul.mubr.f32.vlgmr.msra.gmra.mrb[0].mxu0 %v187_v49  ;;  %17159 = vmatprep.subr.bf16.mxu0 %v17158_v50  ;;  %v217_v59 = vand.u32 4294901760, %v216_v51  ;;  %v226_v60 = vsub.f32 %v17845_v47, %v225_v54  ;;  %v243_v62 = vand.u32 4294901760, %v104_v57  ;;  %v17170_v7 = vpack.c.bf16 %v263_v25, %v256_v24 }
  0x35   :  { %17161 = vmatpush3.bf16.msra.mxu0 %v17158_v50  ;;  %16105 = vmatprep.mubr.f32.mxu0 %v197_v53  ;;  %v234_v61 = vsub.f32 %v101_v52, %v17852_v55  ;;  %v886_v10 = vsel %vm882_vm1, %v56_v8, 0  ;;  %v2690_v13 = vsel %vm882_vm1, %v60_v12, 0  ;;  %v62_v52 = vld [vmem:[#allocation5 + $0x30] sm:$0xff]  ;;  %vm8099_vm3 = vcmask 60416  }
  0x36   :  { %17163 = vmatprep.subr.bf16.mxu0 %v17162_v58  ;;  %v244_v0 = vsub.f32 %v104_v57, %v243_v62  ;;  %v227_v1 = vand.u32 4294901760, %v226_v60  ;;  %v17905_v11 = vand.u32 4294901760, %v886_v10  ;;  %vm8276_vm4 = vcmask 64512  }
  0x37   :  { %v235_v63 = vand.u32 4294901760, %v234_v61  ;;  %vm15461_vm5 = vcmask 257024   ;;  %vm15590_vm6 = vcmask 1041409   ;;  %vm15592_vm7 = vcmask 1042434  }
  0x38   :  { %16106 = vmatmul.mubr.f32.gmra.mrb[2].mxu0 %v207_v56  ;;  %v245_v3 = vand.u32 4294901760, %v244_v0  ;;  %v966_v30 = vsub.f32 %v886_v10, %v17905_v11  ;;  %v3592_v56 = vsel %vm882_vm1, %v62_v52, 0  ;;  %v59_v52 = vld [vmem:[#allocation5 + $0x18] sm:$0xff]  ;;  %vm15594_vm8 = vcmask 1043459  }
  0x39   :  { %16108 = vmatprep.mubr.f32.mxu0 %v217_v59  ;;  %v236_v2 = vsub.f32 %v234_v61, %v235_v63  ;;  %v17984_v59 = vand.u32 4294901760, %v3592_v56  ;;  %vm15596_vm9 = vcmask 1044484   ;;  %vm15598_vm10 = vcmask 1045509  }
  0x3a   :  { %v246_v5 = vsub.f32 %v244_v0, %v245_v3  ;;  %vm15600_vm11 = vcmask 1046534   ;;  %vm15602_vm12 = vcmask 1047559  }
  0x3b   :  { %v237_v4 = vand.u32 4294901760, %v236_v2 }
  0x3c   :  { %16109 = vmatmul.mubr.f32.gmra.mrb[4].mxu0 %v227_v1  ;;  %v247_v6 = vand.u32 4294901760, %v246_v5 }
  0x3d   :  { %16111 = vmatprep.mubr.f32.mxu0 %v237_v4 }
  0x40   :  { %16112 = vmatmul.mubr.f32.gmra.mrb[6].mxu0 %v247_v6 }
  0x41   :  { %16118 = vmatprep.mubr.f32.mxu0 %v17779_v9 }
  0x44   :  { %16119 = vmatmul.mubr.f32.vlgmr.msra.gmra.mrb[0].mxu0 %v17786_v15 }
  0x45   :  { %17165 = vmatpush3.bf16.msra.mxu0 %v17162_v58  ;;  %16121 = vmatprep.mubr.f32.mxu0 %v17795_v20 }
  0x46   :  { %17167 = vmatprep.subr.bf16.mxu0 %v17784_v14 }
  0x48   :  { %16122 = vmatmul.mubr.f32.gmra.mrb[2].mxu0 %v17797_v21 }
  0x49   :  { %16124 = vmatprep.mubr.f32.mxu0 %v17806_v26 }
  0x4c   :  { %16125 = vmatmul.mubr.f32.gmra.mrb[4].mxu0 %v17832_v38 }
  0x4d   :  { %16127 = vmatprep.mubr.f32.mxu0 %v17852_v55 }
  0x50   :  { %16128 = vmatmul.mubr.f32.gmra.mrb[6].mxu0 %v243_v62 }
  0x51   :  { %16134 = vmatprep.mubr.f32.mxu0 %v17793_v19 }
  0x54   :  { %16135 = vmatmul.mubr.f32.vlgmr.msra.gmra.mrb[0].mxu0 %v17802_v23 }
  0x55   :  { %17169 = vmatpush3.bf16.msra.mxu0 %v17784_v14  ;;  %16137 = vmatprep.mubr.f32.mxu0 %v17811_v28 }
  0x56   :  { %17171 = vmatprep.subr.bf16.mxu0 %v17170_v7 }
  0x58   :  { %16138 = vmatmul.mubr.f32.gmra.mrb[2].mxu0 %v17814_v29 }
  0x59   :  { %16140 = vmatprep.mubr.f32.mxu0 %v17825_v34 }
  0x5c   :  { %16141 = vmatmul.mubr.f32.gmra.mrb[4].mxu0 %v17845_v47 }
  0x5d   :  { %16143 = vmatprep.mubr.f32.mxu0 %v234_v61 }
  0x60   :  { %16144 = vmatmul.mubr.f32.gmra.mrb[6].mxu0 %v244_v0  ;;  %v3672_v0 = vsub.f32 %v3592_v56, %v17984_v59 }
  0x61   :  { %16150 = vmatprep.mubr.f32.mxu0 %v175_v27 }
  0x62   :  { %v3673_v4 = vand.u32 4294901760, %v3672_v0 }
  0x64   :  { %16151 = vmatmul.mubr.f32.vlgmr.msra.gmra.mrb[0].mxu0 %v185_v31  ;;  %v3674_v8 = vsub.f32 %v3672_v0, %v3673_v4 }
  0x65   :  { %17173 = vmatpush3.bf16.msra.mxu0 %v17170_v7  ;;  %16153 = vmatprep.mubr.f32.mxu0 %v195_v36 }
  0x66   :  { %17175 = vmatprep.subr.bf16.mxu0 %v17784_v14 }
  0x68   :  { %16154 = vmatmul.mubr.f32.gmra.mrb[2].mxu0 %v205_v37 }
  0x69   :  { %16156 = vmatprep.mubr.f32.mxu0 %v215_v43 }
  0x6c   :  { %16157 = vmatmul.mubr.f32.gmra.mrb[4].mxu0 %v225_v54 }
  0x6d   :  { %16159 = vmatprep.mubr.f32.mxu0 %v235_v63 }
  0x70   :  { %16160 = vmatmul.mubr.f32.gmra.mrb[6].mxu0 %v245_v3 }
  0x71   :  { %16166 = vmatprep.mubr.f32.mxu0 %v17779_v9 }
  0x74   :  { %16167 = vmatmul.mubr.f32.vlgmr.msra.gmra.mrb[0].mxu0 %v17786_v15 }
  0x75   :  { %17177 = vmatpush3.bf16.msra.mxu0 %v17784_v14  ;;  %16169 = vmatprep.mubr.f32.mxu0 %v17795_v20  ;;  %v17916_v14 = vand.u32 4294901760, %v2690_v13 }
  0x77   :  { %v2770_v23 = vsub.f32 %v2690_v13, %v17916_v14  ;;  %v3675_v13 = vand.u32 4294901760, %v3674_v8 }
  0x78   :  { %16170 = vmatmul.mubr.f32.gmra.mrb[2].mxu0 %v17797_v21 }
  0x79   :  { %16172 = vmatprep.mubr.f32.mxu0 %v17806_v26  ;;  %v2771_v31 = vand.u32 4294901760, %v2770_v23 }
  0x7b   :  { %v2772_v39 = vsub.f32 %v2770_v23, %v2771_v31 }
  0x7c   :  { %16173 = vmatmul.mubr.f32.gmra.mrb[4].mxu0 %v17832_v38 }
  0x7d   :  { %16175 = vmatprep.mubr.f32.mxu0 %v17852_v55  ;;  %v2773_v46 = vand.u32 4294901760, %v2772_v39 }
  0x80   :  { %16176 = vmatmul.mubr.f32.gmra.mrb[6].mxu0 %v243_v62 }
  0x81   :  { %16182 = vmatprep.mubr.f32.mxu0 %v17779_v9  ;;  %v17709_v9 = vmov 0.0  }
  0x82   :  { %16194 = vmatprep.subr.mxu1 %v17709_v9  ;;  %16314 = vmatprep.subr.mxu0 %v17709_v9 }
  0x83   :  { %16195 = vmatpush3.xpose.msra.mxu1 %v17905_v11  ;;  %16196 = vmatprep.mubr.msk.f32.mxu1 %vm17710_vm2, %v17709_v9 }
  0x84   :  { %16183 = vmatmul.mubr.f32.vlgmr.msra.gmra.mrb[0].mxu0 %v17786_v15  ;;  %16199 = vmatprep.subr.mxu1 %v17709_v9  ;;  %v15653_v15 = vld [vmem:[%s19343_s3] ss:$0 sm:$0xff] }
  0x85   :  { %16185 = vmatprep.mubr.f32.mxu0 %v17795_v20  ;;  %16315 = vmatpush3.xpose.msra.mxu0 %v17916_v14 }
  0x86   :  { %16319 = vmatprep.subr.mxu0 %v17709_v9 }
  0x88   :  { %16186 = vmatmul.mubr.f32.gmra.mrb[2].mxu0 %v17797_v21 }
  0x89   :  { %16188 = vmatprep.mubr.f32.mxu0 %v17806_v26 }
  0x8c   :  { %16189 = vmatmul.mubr.f32.gmra.mrb[4].mxu0 %v17832_v38  ;;  %v967_v38 = vand.u32 4294901760, %v966_v30 }
  0x8d   :  { %16191 = vmatprep.mubr.f32.mxu0 %v17852_v55  ;;  %v57_v55 = vld [vmem:[#allocation5 + $0x8] sm:$0xff] }
  0x8e   :  { %v968_v45 = vsub.f32 %v966_v30, %v967_v38  ;;  %v1337_v58 = vsel %vm882_vm1, %v57_v55, 0  ;;  %v2239_v55 = vsel %vm882_vm1, %v59_v52, 0 }
  0x8f   :  { %v17989_v61 = vand.u32 4294901760, %v1337_v58 }
  0x90   :  { %16192 = vmatmul.mubr.f32.gmra.mrb[6].mxu0 %v243_v62  ;;  %v969_v49 = vand.u32 4294901760, %v968_v45 }
  0x91   :  { %16316 = vmatprep.mubr.msk.f32.mxu0 %vm17710_vm2, %v17709_v9  ;;  %v17998_v1 = vsub.f32 %v1337_v58, %v17989_v61 }
  0x93   :  { %v1418_v5 = vand.u32 4294901760, %v17998_v1 }
  0x95   :  { %v1419_v10 = vsub.f32 %v17998_v1, %v1418_v5 }
 0x157   :  { %v16184_v16 = vpop.f32.mrb[0].mxu0 }
 0x158   :  { %v17923_v17 = vadd.f32 %v16184_v16, %v15653_v15  ;;  %v820_v18 = vpop.f32.mrb[1].mxu0  ;;  %v64_v16 = vld [vmem:[#allocation5 + $0x40] sm:$0xff] }
 0x159   :  { %v17925_v19 = vadd.f32 %v15653_v15, %v820_v18 }
 0x15b   :  { %v16187_v20 = vpop.f32.mrb[2].mxu0  ;;  %v883_v21 = vsel %vm882_vm1, %v17925_v19, 0  ;;  %v874_v53 = vcombine.high %v17925_v19, %v17925_v19  ;;  %v58_v19 = vld [vmem:[#allocation5 + $0x10] sm:$0xff] }
 0x15c   :  { %v832_v22 = vpop.f32.mrb[3].mxu0  ;;  %v17932_v25 = vand.u32 4294901760, %v883_v21  ;;  %v17967_v51 = vadd.f32 %v16187_v20, %v15653_v15  ;;  %v4494_v20 = vsel %vm882_vm1, %v64_v16, 0 }
 0x15d   :  { %v17930_v24 = vadd.f32 %v15653_v15, %v832_v22  ;;  %v1334_v60 = vsel %vm882_vm1, %v874_v53, 0  ;;  %v1788_v22 = vsel %vm882_vm1, %v58_v19, 0 }
 0x15e   :  { %v955_v34 = vsub.f32 %v883_v21, %v17932_v25  ;;  %v3589_v54 = vsel %vm882_vm1, %v17967_v51, 0  ;;  %v17991_v62 = vand.u32 4294901760, %v1334_v60 }
 0x15f   :  { %v16190_v26 = vpop.f32.mrb[4].mxu0  ;;  %v2687_v27 = vsel %vm882_vm1, %v17930_v24, 0  ;;  %v17980_v57 = vand.u32 4294901760, %v3589_v54 }
 0x160   :  { %v17936_v28 = vadd.f32 %v16190_v26, %v15653_v15  ;;  %v844_v29 = vpop.f32.mrb[5].mxu0  ;;  %v17939_v32 = vand.u32 4294901760, %v2687_v27  ;;  %v956_v44 = vand.u32 4294901760, %v955_v34  ;;  %v1406_v2 = vsub.f32 %v1334_v60, %v17991_v62 }
 0x161   :  { %v17941_v33 = vadd.f32 %v15653_v15, %v844_v29  ;;  %v3661_v63 = vsub.f32 %v3589_v54, %v17980_v57  ;;  %v18060_v26 = vand.u32 4294901760, %v1788_v22 }
 0x162   :  { %v2759_v35 = vsub.f32 %v2687_v27, %v17939_v32  ;;  %v957_v48 = vsub.f32 %v955_v34, %v956_v44  ;;  %v1407_v6 = vand.u32 4294901760, %v1406_v2 }
 0x163   :  { %v16193_v36 = vpop.f32.mrb[6].mxu0  ;;  %v3662_v3 = vand.u32 4294901760, %v3661_v63  ;;  %v4491_v18 = vsel %vm882_vm1, %v17941_v33, 0 }
 0x164   :  { %v856_v37 = vpop.f32.mrb[7].mxu0  ;;  %v2760_v40 = vand.u32 4294901760, %v2759_v35  ;;  %v17945_v41 = vadd.f32 %v16193_v36, %v15653_v15  ;;  %v958_v50 = vand.u32 4294901760, %v957_v48  ;;  %v18050_v21 = vand.u32 4294901760, %v4491_v18  ;;  %v66_v48 = vld [vmem:[#allocation5 + $0x50] sm:$0xff] }
 0x165   :  { %v17947_v42 = vadd.f32 %v15653_v15, %v856_v37  ;;  %v3663_v7 = vsub.f32 %v3661_v63, %v3662_v3  ;;  %v5396_v53 = vsel %vm882_vm1, %v66_v48, 0 }
 0x166   :  { %v2761_v43 = vsub.f32 %v2759_v35, %v2760_v40  ;;  %16197 = vmatmul.mubr.f32.vlgmr.msra.gmra.mrb[0].mxu1 %v958_v50  ;;  %v4563_v29 = vsub.f32 %v4491_v18, %v18050_v21  ;;  %v5393_v50 = vsel %vm882_vm1, %v17936_v28, 0  ;;  %v18132_v56 = vand.u32 4294901760, %v5396_v53 }
 0x167   :  { %16200 = vmatpush3.xpose.msra.mxu1 %v969_v49  ;;  %16201 = vmatprep.mubr.msk.f32.mxu1 %vm17710_vm2, %v17709_v9  ;;  %v3664_v12 = vand.u32 4294901760, %v3663_v7  ;;  %v875_v49 = vcombine.high %v17923_v17, %v17923_v17  ;;  %v18128_v54 = vand.u32 4294901760, %v5393_v50 }
 0x168   :  { %v2762_v47 = vand.u32 4294901760, %v2761_v43  ;;  %16204 = vmatprep.subr.mxu1 %v17709_v9  ;;  %v5476_v60 = vsub.f32 %v5396_v53, %v18132_v56 }
 0x16a   :  { %16317 = vmatmul.mubr.f32.vlgmr.msra.gmra.mrb[8].mxu0 %v2762_v47 }
 0x16b   :  { %16320 = vmatpush3.xpose.msra.mxu0 %v2773_v46  ;;  %16321 = vmatprep.mubr.msk.f32.mxu0 %vm17710_vm2, %v17709_v9 }
 0x16c   :  { %16324 = vmatprep.subr.mxu0 %v17709_v9 }
 0x16e   :  { %16202 = vmatmul.mubr.f32.vlgmr.msra.gmra.mrb[0].mxu1 %v17932_v25 }
 0x16f   :  { %16205 = vmatpush3.xpose.msra.mxu1 %v966_v30  ;;  %16206 = vmatprep.mubr.msk.f32.mxu1 %vm17710_vm2, %v17709_v9 }
 0x170   :  { %16209 = vmatprep.subr.mxu1 %v17709_v9 }
 0x172   :  { %16322 = vmatmul.mubr.f32.vlgmr.msra.gmra.mrb[8].mxu0 %v17939_v32 }
 0x173   :  { %16325 = vmatpush3.xpose.msra.mxu0 %v2770_v23  ;;  %16326 = vmatprep.mubr.msk.f32.mxu0 %vm17710_vm2, %v17709_v9  ;;  %v18054_v23 = vand.u32 4294901760, %v4494_v20 }
 0x174   :  { %16329 = vmatprep.subr.mxu0 %v17709_v9 }
 0x175   :  { %v4574_v30 = vsub.f32 %v4494_v20, %v18054_v23 }
 0x176   :  { %16207 = vmatmul.mubr.f32.vlgmr.msra.gmra.mrb[0].mxu1 %v955_v34  ;;  %v4564_v34 = vand.u32 4294901760, %v4563_v29 }
 0x177   :  { %16210 = vmatpush3.xpose.msra.mxu1 %v17905_v11  ;;  %16211 = vmatprep.mubr.msk.f32.mxu1 %vm17710_vm2, %v17709_v9 }
 0x178   :  { %16214 = vmatprep.subr.mxu1 %v17709_v9 }
 0x17a   :  { %16327 = vmatmul.mubr.f32.vlgmr.msra.gmra.mrb[8].mxu0 %v2759_v35  ;;  %v4575_v35 = vand.u32 4294901760, %v4574_v30 }
 0x17b   :  { %16330 = vmatpush3.xpose.msra.mxu0 %v17916_v14  ;;  %16331 = vmatprep.mubr.msk.f32.mxu0 %vm17710_vm2, %v17709_v9 }
 0x17c   :  { %16334 = vmatprep.subr.mxu0 %v17709_v9  ;;  %v4576_v39 = vsub.f32 %v4574_v30, %v4575_v35 }
 0x17e   :  { %16212 = vmatmul.mubr.f32.vlgmr.msra.gmra.mrb[0].mxu1 %v956_v44  ;;  %v4577_v45 = vand.u32 4294901760, %v4576_v39 }
 0x17f   :  { %16215 = vmatpush3.xpose.msra.mxu1 %v967_v38  ;;  %16216 = vmatprep.mubr.msk.f32.mxu1 %vm17710_vm2, %v17709_v9  ;;  %v4565_v38 = vsub.f32 %v4563_v29, %v4564_v34 }
 0x180   :  { %16219 = vmatprep.subr.mxu1 %v17709_v9 }
 0x181   :  { %v4566_v44 = vand.u32 4294901760, %v4565_v38 }
 0x182   :  { %16332 = vmatmul.mubr.f32.vlgmr.msra.gmra.mrb[8].mxu0 %v2760_v40 }
 0x183   :  { %16335 = vmatpush3.xpose.msra.mxu0 %v2771_v31  ;;  %16336 = vmatprep.mubr.msk.f32.mxu0 %vm17710_vm2, %v17709_v9  ;;  %v18069_v31 = vsub.f32 %v1788_v22, %v18060_v26 }
 0x184   :  { %16339 = vmatprep.subr.mxu0 %v17709_v9 }
 0x185   :  { %v1869_v36 = vand.u32 4294901760, %v18069_v31 }
 0x186   :  { %16217 = vmatmul.mubr.f32.vlgmr.msra.gmra.mrb[0].mxu1 %v17932_v25 }
 0x187   :  { %16220 = vmatpush3.xpose.msra.mxu1 %v17905_v11  ;;  %16221 = vmatprep.mubr.msk.f32.mxu1 %vm17710_vm2, %v17709_v9  ;;  %v1408_v11 = vsub.f32 %v1406_v2, %v1407_v6  ;;  %v1870_v40 = vsub.f32 %v18069_v31, %v1869_v36 }
 0x188   :  { %16224 = vmatprep.subr.mxu1 %v17709_v9 }
 0x189   :  { %v1409_v15 = vand.u32 4294901760, %v1408_v11  ;;  %v1871_v46 = vand.u32 4294901760, %v1870_v40 }
 0x18a   :  { %16337 = vmatmul.mubr.f32.vlgmr.msra.gmra.mrb[8].mxu0 %v17939_v32 }
 0x18b   :  { %16340 = vmatpush3.xpose.msra.mxu0 %v17916_v14  ;;  %16341 = vmatprep.mubr.msk.f32.mxu0 %vm17710_vm2, %v17709_v9  ;;  %v1420_v14 = vand.u32 4294901760, %v1419_v10 }
 0x18c   :  { %16374 = vmatprep.subr.mxu0 %v17709_v9 }
 0x18e   :  { %16222 = vmatmul.mubr.f32.vlgmr.msra.gmra.mrb[0].mxu1 %v17932_v25  ;;  %v1785_v25 = vsel %vm882_vm1, %v17923_v17, 0  ;;  %v2236_v17 = vsel %vm882_vm1, %v875_v49, 0 }
 0x18f   :  { %16225 = vmatpush3.xpose.msra.mxu1 %v17989_v61  ;;  %16226 = vmatprep.mubr.msk.f32.mxu1 %vm17710_vm2, %v17709_v9  ;;  %v18062_v27 = vand.u32 4294901760, %v1785_v25  ;;  %v18139_v58 = vand.u32 4294901760, %v2236_v17 }
 0x190   :  { %16229 = vmatprep.subr.mxu1 %v17709_v9 }
 0x192   :  { %16342 = vmatmul.mubr.f32.vlgmr.msra.gmra.mrb[8].mxu0 %v17939_v32  ;;  %16227 = vmatmul.mubr.f32.vlgmr.msra.gmra.mrb[2].mxu1 %v1409_v15  ;;  %v18075_v32 = vsub.f32 %v1785_v25, %v18062_v27  ;;  %v61_v15 = vld [vmem:[#allocation5 + $0x28] sm:$0xff] }
 0x193   :  { %16375 = vmatpush3.xpose.msra.mxu0 %v17984_v59  ;;  %16376 = vmatprep.mubr.msk.f32.mxu0 %vm17710_vm2, %v17709_v9  ;;  %v3141_v19 = vsel %vm882_vm1, %v61_v15, 0 }
 0x194   :  { %16379 = vmatprep.subr.mxu0 %v17709_v9  ;;  %16230 = vmatpush3.xpose.msra.mxu1 %v1420_v14  ;;  %v1858_v37 = vand.u32 4294901760, %v18075_v32  ;;  %v6295_v14 = vsel %vm882_vm1, %v17947_v42, 0 }
 0x195   :  { %16231 = vmatprep.mubr.msk.f32.mxu1 %vm17710_vm2, %v17709_v9  ;;  %16234 = vmatprep.subr.mxu1 %v17709_v9  ;;  %v18205_v18 = vand.u32 4294901760, %v6295_v14 }
 0x196   :  { %16377 = vmatmul.mubr.f32.vlgmr.msra.gmra.mrb[10].mxu0 %v3664_v12  ;;  %v1859_v43 = vsub.f32 %v18075_v32, %v1858_v37  ;;  %v68_v12 = vld [vmem:[#allocation5 + $0x60] sm:$0xff] }
 0x197   :  { %16380 = vmatpush3.xpose.msra.mxu0 %v3675_v13  ;;  %16381 = vmatprep.mubr.msk.f32.mxu0 %vm17710_vm2, %v17709_v9  ;;  %v876_v13 = vcombine.high %v17930_v24, %v17930_v24  ;;  %v6298_v16 = vsel %vm882_vm1, %v68_v12, 0 }
 0x198   :  { %16384 = vmatprep.subr.mxu0 %v17709_v9  ;;  %v1860_v47 = vand.u32 4294901760, %v1859_v43  ;;  %v18209_v20 = vand.u32 4294901760, %v6298_v16 }
 0x199   :  { %v3138_v24 = vsel %vm882_vm1, %v876_v13, 0 }
 0x19a   :  { %16232 = vmatmul.mubr.f32.vlgmr.msra.gmra.mrb[2].mxu1 %v17991_v62  ;;  %v18216_v22 = vand.u32 4294901760, %v3138_v24  ;;  %v6378_v25 = vsub.f32 %v6298_v16, %v18209_v20 }
 0x19b   :  { %16235 = vmatpush3.xpose.msra.mxu1 %v17998_v1  ;;  %16236 = vmatprep.mubr.msk.f32.mxu1 %vm17710_vm2, %v17709_v9 }
 0x19c   :  { %16239 = vmatprep.subr.mxu1 %v17709_v9 }
 0x19e   :  { %16382 = vmatmul.mubr.f32.vlgmr.msra.gmra.mrb[10].mxu0 %v17980_v57 }
 0x19f   :  { %16385 = vmatpush3.xpose.msra.mxu0 %v3672_v0  ;;  %16386 = vmatprep.mubr.msk.f32.mxu0 %vm17710_vm2, %v17709_v9  ;;  %v5477_v0 = vand.u32 4294901760, %v5476_v60 }
 0x1a0   :  { %16389 = vmatprep.subr.mxu0 %v17709_v9 }
 0x1a2   :  { %16237 = vmatmul.mubr.f32.vlgmr.msra.gmra.mrb[2].mxu1 %v1406_v2 }
 0x1a3   :  { %16240 = vmatpush3.xpose.msra.mxu1 %v17989_v61  ;;  %16241 = vmatprep.mubr.msk.f32.mxu1 %vm17710_vm2, %v17709_v9 }
 0x1a4   :  { %16244 = vmatprep.subr.mxu1 %v17709_v9 }
 0x1a6   :  { %16387 = vmatmul.mubr.f32.vlgmr.msra.gmra.mrb[10].mxu0 %v3661_v63 }
 0x1a7   :  { %16390 = vmatpush3.xpose.msra.mxu0 %v17984_v59  ;;  %16391 = vmatprep.mubr.msk.f32.mxu0 %vm17710_vm2, %v17709_v9 }
 0x1a8   :  { %16394 = vmatprep.subr.mxu0 %v17709_v9 }
 0x1aa   :  { %16242 = vmatmul.mubr.f32.vlgmr.msra.gmra.mrb[2].mxu1 %v1407_v6 }
 0x1ab   :  { %16245 = vmatpush3.xpose.msra.mxu1 %v1418_v5  ;;  %16246 = vmatprep.mubr.msk.f32.mxu1 %vm17710_vm2, %v17709_v9 }
 0x1ac   :  { %16249 = vmatprep.subr.mxu1 %v17709_v9 }
 0x1ae   :  { %16392 = vmatmul.mubr.f32.vlgmr.msra.gmra.mrb[10].mxu0 %v3662_v3 }
 0x1af   :  { %16395 = vmatpush3.xpose.msra.mxu0 %v3673_v4  ;;  %16396 = vmatprep.mubr.msk.f32.mxu0 %vm17710_vm2, %v17709_v9  ;;  %v5478_v4 = vsub.f32 %v5476_v60, %v5477_v0 }
 0x1b0   :  { %16399 = vmatprep.subr.mxu0 %v17709_v9 }
 0x1b1   :  { %v5479_v8 = vand.u32 4294901760, %v5478_v4 }
 0x1b2   :  { %16247 = vmatmul.mubr.f32.vlgmr.msra.gmra.mrb[2].mxu1 %v17991_v62 }
 0x1b3   :  { %16250 = vmatpush3.xpose.msra.mxu1 %v17989_v61  ;;  %16251 = vmatprep.mubr.msk.f32.mxu1 %vm17710_vm2, %v17709_v9 }
 0x1b4   :  { %16254 = vmatprep.subr.mxu1 %v17709_v9 }
 0x1b6   :  { %16397 = vmatmul.mubr.f32.vlgmr.msra.gmra.mrb[10].mxu0 %v17980_v57 }
 0x1b7   :  { %16400 = vmatpush3.xpose.msra.mxu0 %v17984_v59  ;;  %16401 = vmatprep.mubr.msk.f32.mxu0 %vm17710_vm2, %v17709_v9  ;;  %v5465_v59 = vsub.f32 %v5393_v50, %v18128_v54 }
 0x1b8   :  { %16434 = vmatprep.subr.mxu0 %v17709_v9 }
 0x1b9   :  { %v5466_v63 = vand.u32 4294901760, %v5465_v59 }
 0x1ba   :  { %16252 = vmatmul.mubr.f32.vlgmr.msra.gmra.mrb[2].mxu1 %v17991_v62  ;;  %v18152_v62 = vsub.f32 %v2236_v17, %v18139_v58 }
 0x1bb   :  { %16255 = vmatpush3.xpose.msra.mxu1 %v18060_v26  ;;  %16256 = vmatprep.mubr.msk.f32.mxu1 %vm17710_vm2, %v17709_v9  ;;  %v5467_v3 = vsub.f32 %v5465_v59, %v5466_v63 }
 0x1bc   :  { %16259 = vmatprep.subr.mxu1 %v17709_v9  ;;  %v2309_v2 = vand.u32 4294901760, %v18152_v62 }
 0x1bd   :  { %v5468_v7 = vand.u32 4294901760, %v5467_v3 }
 0x1be   :  { %16402 = vmatmul.mubr.f32.vlgmr.msra.gmra.mrb[10].mxu0 %v17980_v57  ;;  %16257 = vmatmul.mubr.f32.vlgmr.msra.gmra.mrb[4].mxu1 %v1860_v47  ;;  %v18137_v57 = vand.u32 4294901760, %v2239_v55  ;;  %v2310_v6 = vsub.f32 %v18152_v62, %v2309_v2  ;;  %v63_v47 = vld [vmem:[#allocation5 + $0x38] sm:$0xff] }
 0x1bf   :  { %16435 = vmatpush3.xpose.msra.mxu0 %v18054_v23  ;;  %16436 = vmatprep.mubr.msk.f32.mxu0 %vm17710_vm2, %v17709_v9  ;;  %v4043_v50 = vsel %vm882_vm1, %v63_v47, 0 }
 0x1c0   :  { %16439 = vmatprep.subr.mxu0 %v17709_v9  ;;  %16260 = vmatpush3.xpose.msra.mxu1 %v1871_v46  ;;  %v18146_v61 = vsub.f32 %v2239_v55, %v18137_v57  ;;  %v2311_v11 = vand.u32 4294901760, %v2310_v6  ;;  %v7197_v46 = vsel %vm882_vm1, %v17945_v41, 0  ;;  %v18291_v53 = vand.u32 4294901760, %v4043_v50 }
 0x1c1   :  { %16261 = vmatprep.mubr.msk.f32.mxu1 %vm17710_vm2, %v17709_v9  ;;  %16264 = vmatprep.subr.mxu1 %v17709_v9  ;;  %v18282_v49 = vand.u32 4294901760, %v7197_v46  ;;  %v878_v6 = vcombine.high %v17941_v33, %v17941_v33 }
 0x1c2   :  { %16437 = vmatmul.mubr.f32.vlgmr.msra.gmra.mrb[12].mxu0 %v4566_v44  ;;  %v2320_v1 = vand.u32 4294901760, %v18146_v61  ;;  %v70_v44 = vld [vmem:[#allocation5 + $0x70] sm:$0xff]  ;;  %v4123_v17 = vsub.f32 %v4043_v50, %v18291_v53  ;;  %v69_v50 = vld [vmem:[#allocation5 + $0x68] sm:$0xff] }
 0x1c3   :  { %16440 = vmatpush3.xpose.msra.mxu0 %v4577_v45  ;;  %16441 = vmatprep.mubr.msk.f32.mxu0 %vm17710_vm2, %v17709_v9  ;;  %v877_v45 = vcombine.high %v17967_v51, %v17967_v51  ;;  %v7200_v48 = vsel %vm882_vm1, %v70_v44, 0  ;;  %v7269_v55 = vsub.f32 %v7197_v46, %v18282_v49 }
 0x1c4   :  { %16444 = vmatprep.subr.mxu0 %v17709_v9  ;;  %v2321_v5 = vsub.f32 %v18146_v61, %v2320_v1  ;;  %v18286_v52 = vand.u32 4294901760, %v7200_v48 }
 0x1c5   :  { %v4040_v51 = vsel %vm882_vm1, %v877_v45, 0 }
 0x1c6   :  { %16262 = vmatmul.mubr.f32.vlgmr.msra.gmra.mrb[4].mxu1 %v18062_v27  ;;  %v2322_v10 = vand.u32 4294901760, %v2321_v5 }
 0x1c7   :  { %16265 = vmatpush3.xpose.msra.mxu1 %v18069_v31  ;;  %16266 = vmatprep.mubr.msk.f32.mxu1 %vm17710_vm2, %v17709_v9 }
 0x1c8   :  { %16269 = vmatprep.subr.mxu1 %v17709_v9 }
 0x1ca   :  { %16442 = vmatmul.mubr.f32.vlgmr.msra.gmra.mrb[12].mxu0 %v18050_v21 }
 0x1cb   :  { %16445 = vmatpush3.xpose.msra.mxu0 %v4574_v30  ;;  %16446 = vmatprep.mubr.msk.f32.mxu0 %vm17710_vm2, %v17709_v9  ;;  %v6379_v30 = vand.u32 4294901760, %v6378_v25 }
 0x1cc   :  { %16449 = vmatprep.subr.mxu0 %v17709_v9 }
 0x1ce   :  { %16267 = vmatmul.mubr.f32.vlgmr.msra.gmra.mrb[4].mxu1 %v18075_v32 }
 0x1cf   :  { %16270 = vmatpush3.xpose.msra.mxu1 %v18060_v26  ;;  %16271 = vmatprep.mubr.msk.f32.mxu1 %vm17710_vm2, %v17709_v9 }
 0x1d0   :  { %16274 = vmatprep.subr.mxu1 %v17709_v9 }
 0x1d2   :  { %16447 = vmatmul.mubr.f32.vlgmr.msra.gmra.mrb[12].mxu0 %v4563_v29 }
 0x1d3   :  { %16450 = vmatpush3.xpose.msra.mxu0 %v18054_v23  ;;  %16451 = vmatprep.mubr.msk.f32.mxu0 %vm17710_vm2, %v17709_v9 }
 0x1d4   :  { %16454 = vmatprep.subr.mxu0 %v17709_v9 }
 0x1d6   :  { %16272 = vmatmul.mubr.f32.vlgmr.msra.gmra.mrb[4].mxu1 %v1858_v37 }
 0x1d7   :  { %16275 = vmatpush3.xpose.msra.mxu1 %v1869_v36  ;;  %16276 = vmatprep.mubr.msk.f32.mxu1 %vm17710_vm2, %v17709_v9 }
 0x1d8   :  { %16279 = vmatprep.subr.mxu1 %v17709_v9 }
 0x1da   :  { %16452 = vmatmul.mubr.f32.vlgmr.msra.gmra.mrb[12].mxu0 %v4564_v34 }
 0x1db   :  { %16455 = vmatpush3.xpose.msra.mxu0 %v4575_v35  ;;  %16456 = vmatprep.mubr.msk.f32.mxu0 %vm17710_vm2, %v17709_v9  ;;  %v6380_v35 = vsub.f32 %v6378_v25, %v6379_v30 }
 0x1dc   :  { %16459 = vmatprep.subr.mxu0 %v17709_v9 }
 0x1dd   :  { %v6381_v39 = vand.u32 4294901760, %v6380_v35 }
 0x1de   :  { %16277 = vmatmul.mubr.f32.vlgmr.msra.gmra.mrb[4].mxu1 %v18062_v27 }
 0x1df   :  { %16280 = vmatpush3.xpose.msra.mxu1 %v18060_v26  ;;  %16281 = vmatprep.mubr.msk.f32.mxu1 %vm17710_vm2, %v17709_v9 }
 0x1e0   :  { %16284 = vmatprep.subr.mxu1 %v17709_v9 }
 0x1e2   :  { %16457 = vmatmul.mubr.f32.vlgmr.msra.gmra.mrb[12].mxu0 %v18050_v21 }
 0x1e3   :  { %16460 = vmatpush3.xpose.msra.mxu0 %v18054_v23  ;;  %16461 = vmatprep.mubr.msk.f32.mxu0 %vm17710_vm2, %v17709_v9  ;;  %v6367_v23 = vsub.f32 %v6295_v14, %v18205_v18 }
 0x1e4   :  { %16494 = vmatprep.subr.mxu0 %v17709_v9 }
 0x1e5   :  { %v6368_v29 = vand.u32 4294901760, %v6367_v23 }
 0x1e6   :  { %16282 = vmatmul.mubr.f32.vlgmr.msra.gmra.mrb[4].mxu1 %v18062_v27  ;;  %v18229_v27 = vsub.f32 %v3138_v24, %v18216_v22 }
 0x1e7   :  { %16285 = vmatpush3.xpose.msra.mxu1 %v18137_v57  ;;  %16286 = vmatprep.mubr.msk.f32.mxu1 %vm17710_vm2, %v17709_v9  ;;  %v6369_v34 = vsub.f32 %v6367_v23, %v6368_v29 }
 0x1e8   :  { %16289 = vmatprep.subr.mxu1 %v17709_v9  ;;  %v3211_v32 = vand.u32 4294901760, %v18229_v27 }
 0x1e9   :  { %v6370_v38 = vand.u32 4294901760, %v6369_v34 }
 0x1ea   :  { %16462 = vmatmul.mubr.f32.vlgmr.msra.gmra.mrb[12].mxu0 %v18050_v21  ;;  %16287 = vmatmul.mubr.f32.vlgmr.msra.gmra.mrb[6].mxu1 %v2311_v11  ;;  %v18214_v21 = vand.u32 4294901760, %v3141_v19  ;;  %v3212_v37 = vsub.f32 %v18229_v27, %v3211_v32 }
 0x1eb   :  { %16495 = vmatpush3.xpose.msra.mxu0 %v18132_v56  ;;  %16496 = vmatprep.mubr.msk.f32.mxu0 %vm17710_vm2, %v17709_v9 }
 0x1ec   :  { %16499 = vmatprep.subr.mxu0 %v17709_v9  ;;  %16290 = vmatpush3.xpose.msra.mxu1 %v2322_v10  ;;  %v18223_v26 = vsub.f32 %v3141_v19, %v18214_v21  ;;  %v3213_v43 = vand.u32 4294901760, %v3212_v37  ;;  %v4942_v10 = vsel %vm882_vm1, %v878_v6, 0 }
 0x1ed   :  { %16291 = vmatprep.mubr.msk.f32.mxu1 %vm17710_vm2, %v17709_v9  ;;  %16294 = vmatprep.subr.mxu1 %v17709_v9  ;;  %v18351_v12 = vand.u32 4294901760, %v4942_v10 }
 0x1ee   :  { %16497 = vmatmul.mubr.f32.vlgmr.msra.gmra.mrb[14].mxu0 %v5468_v7  ;;  %v3222_v31 = vand.u32 4294901760, %v18223_v26  ;;  %v65_v7 = vld [vmem:[#allocation5 + $0x48] sm:$0xff] }
 0x1ef   :  { %16500 = vmatpush3.xpose.msra.mxu0 %v5479_v8  ;;  %16501 = vmatprep.mubr.msk.f32.mxu0 %vm17710_vm2, %v17709_v9  ;;  %v4945_v8 = vsel %vm882_vm1, %v65_v7, 0  ;;  %v5014_v15 = vsub.f32 %v4942_v10, %v18351_v12 }
 0x1f0   :  { %16504 = vmatprep.subr.mxu0 %v17709_v9  ;;  %v3223_v36 = vsub.f32 %v18223_v26, %v3222_v31  ;;  %v4948_v11 = vand.u32 4294901760, %v4945_v8 }
 0x1f1   :  { %v5015_v24 = vand.u32 4294901760, %v5014_v15 }
 0x1f2   :  { %16292 = vmatmul.mubr.f32.vlgmr.msra.gmra.mrb[6].mxu1 %v18139_v58  ;;  %v3224_v40 = vand.u32 4294901760, %v3223_v36  ;;  %v5025_v14 = vsub.f32 %v4945_v8, %v4948_v11 }
 0x1f3   :  { %16295 = vmatpush3.xpose.msra.mxu1 %v18146_v61  ;;  %16296 = vmatprep.mubr.msk.f32.mxu1 %vm17710_vm2, %v17709_v9 }
 0x1f4   :  { %16299 = vmatprep.subr.mxu1 %v17709_v9 }
 0x1f6   :  { %16502 = vmatmul.mubr.f32.vlgmr.msra.gmra.mrb[14].mxu0 %v18128_v54 }
 0x1f7   :  { %16505 = vmatpush3.xpose.msra.mxu0 %v5476_v60  ;;  %16506 = vmatprep.mubr.msk.f32.mxu0 %vm17710_vm2, %v17709_v9  ;;  %v4124_v60 = vand.u32 4294901760, %v4123_v17 }
 0x1f8   :  { %16509 = vmatprep.subr.mxu0 %v17709_v9 }
 0x1fa   :  { %16297 = vmatmul.mubr.f32.vlgmr.msra.gmra.mrb[6].mxu1 %v18152_v62 }
 0x1fb   :  { %16300 = vmatpush3.xpose.msra.mxu1 %v18137_v57  ;;  %16301 = vmatprep.mubr.msk.f32.mxu1 %vm17710_vm2, %v17709_v9 }
 0x1fc   :  { %16304 = vmatprep.subr.mxu1 %v17709_v9 }
 0x1fe   :  { %16507 = vmatmul.mubr.f32.vlgmr.msra.gmra.mrb[14].mxu0 %v5465_v59 }
 0x1ff   :  { %16510 = vmatpush3.xpose.msra.mxu0 %v18132_v56  ;;  %16511 = vmatprep.mubr.msk.f32.mxu0 %vm17710_vm2, %v17709_v9 }
 0x200   :  { %16514 = vmatprep.subr.mxu0 %v17709_v9 }
 0x202   :  { %16302 = vmatmul.mubr.f32.vlgmr.msra.gmra.mrb[6].mxu1 %v2309_v2 }
 0x203   :  { %16305 = vmatpush3.xpose.msra.mxu1 %v2320_v1  ;;  %16306 = vmatprep.mubr.msk.f32.mxu1 %vm17710_vm2, %v17709_v9 }
 0x204   :  { %16309 = vmatprep.subr.mxu1 %v17709_v9 }
 0x206   :  { %16512 = vmatmul.mubr.f32.vlgmr.msra.gmra.mrb[14].mxu0 %v5466_v63 }
 0x207   :  { %16515 = vmatpush3.xpose.msra.mxu0 %v5477_v0  ;;  %16516 = vmatprep.mubr.msk.f32.mxu0 %vm17710_vm2, %v17709_v9  ;;  %v4125_v0 = vsub.f32 %v4123_v17, %v4124_v60 }
 0x208   :  { %16519 = vmatprep.subr.mxu0 %v17709_v9 }
 0x209   :  { %v4126_v4 = vand.u32 4294901760, %v4125_v0 }
 0x20a   :  { %16307 = vmatmul.mubr.f32.vlgmr.msra.gmra.mrb[6].mxu1 %v18139_v58 }
 0x20b   :  { %16310 = vmatpush3.xpose.msra.mxu1 %v18137_v57  ;;  %16311 = vmatprep.mubr.msk.f32.mxu1 %vm17710_vm2, %v17709_v9 }
 0x20c   :  { %16344 = vmatprep.subr.mxu1 %v17709_v9 }
 0x20e   :  { %16517 = vmatmul.mubr.f32.vlgmr.msra.gmra.mrb[14].mxu0 %v18128_v54 }
 0x20f   :  { %16520 = vmatpush3.xpose.msra.mxu0 %v18132_v56  ;;  %16521 = vmatprep.mubr.msk.f32.mxu0 %vm17710_vm2, %v17709_v9  ;;  %v7280_v56 = vsub.f32 %v7200_v48, %v18286_v52 }
 0x210   :  { %16554 = vmatprep.subr.mxu0 %v17709_v9 }
 0x211   :  { %v7281_v59 = vand.u32 4294901760, %v7280_v56 }
 0x212   :  { %16312 = vmatmul.mubr.f32.vlgmr.msra.gmra.mrb[6].mxu1 %v18139_v58  ;;  %v7270_v58 = vand.u32 4294901760, %v7269_v55 }
 0x213   :  { %16345 = vmatpush3.xpose.msra.mxu1 %v18214_v21  ;;  %16346 = vmatprep.mubr.msk.f32.mxu1 %vm17710_vm2, %v17709_v9  ;;  %v7282_v63 = vsub.f32 %v7280_v56, %v7281_v59 }
 0x214   :  { %16349 = vmatprep.subr.mxu1 %v17709_v9  ;;  %v7271_v62 = vsub.f32 %v7269_v55, %v7270_v58 }
 0x215   :  { %v7283_v3 = vand.u32 4294901760, %v7282_v63 }
 0x216   :  { %16522 = vmatmul.mubr.f32.vlgmr.msra.gmra.mrb[14].mxu0 %v18128_v54  ;;  %16347 = vmatmul.mubr.f32.vlgmr.msra.gmra.mrb[8].mxu1 %v3213_v43  ;;  %v18293_v54 = vand.u32 4294901760, %v4040_v51  ;;  %v7272_v2 = vand.u32 4294901760, %v7271_v62 }
 0x217   :  { %16555 = vmatpush3.xpose.msra.mxu0 %v18209_v20  ;;  %16556 = vmatprep.mubr.msk.f32.mxu0 %vm17710_vm2, %v17709_v9 }
 0x218   :  { %16559 = vmatprep.subr.mxu0 %v17709_v9  ;;  %16350 = vmatpush3.xpose.msra.mxu1 %v3224_v40  ;;  %v4112_v57 = vsub.f32 %v4040_v51, %v18293_v54 }
 0x219   :  { %16351 = vmatprep.mubr.msk.f32.mxu1 %vm17710_vm2, %v17709_v9  ;;  %16354 = vmatprep.subr.mxu1 %v17709_v9 }
 0x21a   :  { %16557 = vmatmul.mubr.f32.vlgmr.msra.gmra.mrb[16].mxu0 %v6370_v38  ;;  %v4113_v61 = vand.u32 4294901760, %v4112_v57 }
 0x21b   :  { %16560 = vmatpush3.xpose.msra.mxu0 %v6381_v39  ;;  %16561 = vmatprep.mubr.msk.f32.mxu0 %vm17710_vm2, %v17709_v9 }
 0x21c   :  { %16564 = vmatprep.subr.mxu0 %v17709_v9  ;;  %v4114_v1 = vsub.f32 %v4112_v57, %v4113_v61 }
 0x21e   :  { %16352 = vmatmul.mubr.f32.vlgmr.msra.gmra.mrb[8].mxu1 %v18216_v22  ;;  %v4115_v5 = vand.u32 4294901760, %v4114_v1 }
 0x21f   :  { %16355 = vmatpush3.xpose.msra.mxu1 %v18223_v26  ;;  %16356 = vmatprep.mubr.msk.f32.mxu1 %vm17710_vm2, %v17709_v9  ;;  %v879_v26 = vcombine.high %v17936_v28, %v17936_v28 }
 0x220   :  { %16359 = vmatprep.subr.mxu1 %v17709_v9 }
 0x222   :  { %16562 = vmatmul.mubr.f32.vlgmr.msra.gmra.mrb[16].mxu0 %v18205_v18 }
 0x223   :  { %16565 = vmatpush3.xpose.msra.mxu0 %v6378_v25  ;;  %16566 = vmatprep.mubr.msk.f32.mxu0 %vm17710_vm2, %v17709_v9 }
 0x224   :  { %16569 = vmatprep.subr.mxu0 %v17709_v9 }
 0x226   :  { %16357 = vmatmul.mubr.f32.vlgmr.msra.gmra.mrb[8].mxu1 %v18229_v27  ;;  %v67_v27 = vld [vmem:[#allocation5 + $0x58] sm:$0xff] }
 0x227   :  { %16360 = vmatpush3.xpose.msra.mxu1 %v18214_v21  ;;  %16361 = vmatprep.mubr.msk.f32.mxu1 %vm17710_vm2, %v17709_v9 }
 0x228   :  { %16364 = vmatprep.subr.mxu1 %v17709_v9 }
 0x22a   :  { %16567 = vmatmul.mubr.f32.vlgmr.msra.gmra.mrb[16].mxu0 %v6367_v23 }
 0x22b   :  { %16570 = vmatpush3.xpose.msra.mxu0 %v18209_v20  ;;  %16571 = vmatprep.mubr.msk.f32.mxu0 %vm17710_vm2, %v17709_v9 }
 0x22c   :  { %16574 = vmatprep.subr.mxu0 %v17709_v9 }
 0x22e   :  { %16362 = vmatmul.mubr.f32.vlgmr.msra.gmra.mrb[8].mxu1 %v3211_v32 }
 0x22f   :  { %16365 = vmatpush3.xpose.msra.mxu1 %v3222_v31  ;;  %16366 = vmatprep.mubr.msk.f32.mxu1 %vm17710_vm2, %v17709_v9 }
 0x230   :  { %16369 = vmatprep.subr.mxu1 %v17709_v9 }
 0x232   :  { %16572 = vmatmul.mubr.f32.vlgmr.msra.gmra.mrb[16].mxu0 %v6368_v29  ;;  %v5847_v29 = vsel %vm882_vm1, %v67_v27, 0 }
 0x233   :  { %16575 = vmatpush3.xpose.msra.mxu0 %v6379_v30  ;;  %16576 = vmatprep.mubr.msk.f32.mxu0 %vm17710_vm2, %v17709_v9  ;;  %v5844_v30 = vsel %vm882_vm1, %v879_v26, 0  ;;  %v5850_v31 = vand.u32 4294901760, %v5847_v29 }
 0x234   :  { %16579 = vmatprep.subr.mxu0 %v17709_v9  ;;  %v18394_v32 = vand.u32 4294901760, %v5844_v30 }
 0x235   :  { %v5927_v36 = vsub.f32 %v5847_v29, %v5850_v31 }
 0x236   :  { %16367 = vmatmul.mubr.f32.vlgmr.msra.gmra.mrb[8].mxu1 %v18216_v22  ;;  %v5916_v28 = vsub.f32 %v5844_v30, %v18394_v32 }
 0x237   :  { %16370 = vmatpush3.xpose.msra.mxu1 %v18214_v21  ;;  %16371 = vmatprep.mubr.msk.f32.mxu1 %vm17710_vm2, %v17709_v9  ;;  %v5928_v40 = vand.u32 4294901760, %v5927_v36 }
 0x238   :  { %16404 = vmatprep.subr.mxu1 %v17709_v9  ;;  %v5917_v43 = vand.u32 4294901760, %v5916_v28 }
 0x239   :  { %v5929_v45 = vsub.f32 %v5927_v36, %v5928_v40 }
 0x23a   :  { %16577 = vmatmul.mubr.f32.vlgmr.msra.gmra.mrb[16].mxu0 %v18205_v18  ;;  %v5918_v46 = vsub.f32 %v5916_v28, %v5917_v43 }
 0x23b   :  { %16580 = vmatpush3.xpose.msra.mxu0 %v18209_v20  ;;  %16581 = vmatprep.mubr.msk.f32.mxu0 %vm17710_vm2, %v17709_v9  ;;  %v5026_v20 = vand.u32 4294901760, %v5025_v14  ;;  %v5930_v47 = vand.u32 4294901760, %v5929_v45 }
 0x23c   :  { %16614 = vmatprep.subr.mxu0 %v17709_v9  ;;  %v5919_v48 = vand.u32 4294901760, %v5918_v46 }
 0x23d   :  { %v5027_v21 = vsub.f32 %v5025_v14, %v5026_v20 }
 0x23e   :  { %16372 = vmatmul.mubr.f32.vlgmr.msra.gmra.mrb[8].mxu1 %v18216_v22  ;;  %v5016_v22 = vsub.f32 %v5014_v15, %v5015_v24 }
 0x23f   :  { %16405 = vmatpush3.xpose.msra.mxu1 %v18291_v53  ;;  %16406 = vmatprep.mubr.msk.f32.mxu1 %vm17710_vm2, %v17709_v9  ;;  %v5028_v23 = vand.u32 4294901760, %v5027_v21 }
 0x240   :  { %16409 = vmatprep.subr.mxu1 %v17709_v9  ;;  %v5017_v25 = vand.u32 4294901760, %v5016_v22 }
 0x242   :  { %16582 = vmatmul.mubr.f32.vlgmr.msra.gmra.mrb[16].mxu0 %v18205_v18  ;;  %16407 = vmatmul.mubr.f32.vlgmr.msra.gmra.mrb[10].mxu1 %v4115_v5 }
 0x243   :  { %16615 = vmatpush3.xpose.msra.mxu0 %v18286_v52  ;;  %16616 = vmatprep.mubr.msk.f32.mxu0 %vm17710_vm2, %v17709_v9 }
 0x244   :  { %16619 = vmatprep.subr.mxu0 %v17709_v9  ;;  %16410 = vmatpush3.xpose.msra.mxu1 %v4126_v4 }
 0x245   :  { %16411 = vmatprep.mubr.msk.f32.mxu1 %vm17710_vm2, %v17709_v9  ;;  %16414 = vmatprep.subr.mxu1 %v17709_v9 }
 0x246   :  { %16617 = vmatmul.mubr.f32.vlgmr.msra.gmra.mrb[18].mxu0 %v7272_v2  ;;  %v881_v2 = vcombine.high %v17945_v41, %v17945_v41 }
 0x247   :  { %16620 = vmatpush3.xpose.msra.mxu0 %v7283_v3  ;;  %16621 = vmatprep.mubr.msk.f32.mxu0 %vm17710_vm2, %v17709_v9  ;;  %v71_v3 = vld [vmem:[#allocation5 + $0x78] sm:$0xff] }
 0x248   :  { %16624 = vmatprep.subr.mxu0 %v17709_v9  ;;  %v7651_v4 = vsel %vm882_vm1, %v71_v3, 0  ;;  %v7648_v5 = vsel %vm882_vm1, %v881_v2, 0 }
 0x249   :  { %v7654_v6 = vand.u32 4294901760, %v7651_v4  ;;  %v7719_v7 = vand.u32 4294901760, %v7648_v5 }
 0x24a   :  { %16412 = vmatmul.mubr.f32.vlgmr.msra.gmra.mrb[10].mxu1 %v18293_v54 }
 0x24b   :  { %16415 = vmatpush3.xpose.msra.mxu1 %v4123_v17  ;;  %16416 = vmatprep.mubr.msk.f32.mxu1 %vm17710_vm2, %v17709_v9 }
 0x24c   :  { %16419 = vmatprep.subr.mxu1 %v17709_v9 }
 0x24e   :  { %16622 = vmatmul.mubr.f32.vlgmr.msra.gmra.mrb[18].mxu0 %v18282_v49 }
 0x24f   :  { %16625 = vmatpush3.xpose.msra.mxu0 %v7280_v56  ;;  %16626 = vmatprep.mubr.msk.f32.mxu0 %vm17710_vm2, %v17709_v9 }
 0x250   :  { %16629 = vmatprep.subr.mxu0 %v17709_v9 }
 0x252   :  { %16417 = vmatmul.mubr.f32.vlgmr.msra.gmra.mrb[10].mxu1 %v4112_v57 }
 0x253   :  { %16420 = vmatpush3.xpose.msra.mxu1 %v18291_v53  ;;  %16421 = vmatprep.mubr.msk.f32.mxu1 %vm17710_vm2, %v17709_v9 }
 0x254   :  { %16424 = vmatprep.subr.mxu1 %v17709_v9 }
 0x256   :  { %16627 = vmatmul.mubr.f32.vlgmr.msra.gmra.mrb[18].mxu0 %v7269_v55 }
 0x257   :  { %16630 = vmatpush3.xpose.msra.mxu0 %v18286_v52  ;;  %16631 = vmatprep.mubr.msk.f32.mxu0 %vm17710_vm2, %v17709_v9 }
 0x258   :  { %16634 = vmatprep.subr.mxu0 %v17709_v9 }
 0x25a   :  { %16422 = vmatmul.mubr.f32.vlgmr.msra.gmra.mrb[10].mxu1 %v4113_v61 }
 0x25b   :  { %16425 = vmatpush3.xpose.msra.mxu1 %v4124_v60  ;;  %16426 = vmatprep.mubr.msk.f32.mxu1 %vm17710_vm2, %v17709_v9 }
 0x25c   :  { %16429 = vmatprep.subr.mxu1 %v17709_v9 }
 0x25e   :  { %16632 = vmatmul.mubr.f32.vlgmr.msra.gmra.mrb[18].mxu0 %v7270_v58 }
 0x25f   :  { %16635 = vmatpush3.xpose.msra.mxu0 %v7281_v59  ;;  %16636 = vmatprep.mubr.msk.f32.mxu0 %vm17710_vm2, %v17709_v9 }
 0x260   :  { %16639 = vmatprep.subr.mxu0 %v17709_v9 }
 0x261   :  { %v18362_v16 = vpop.f32.mrb[0].mxu1 }
 0x262   :  { %v16223_v18 = vpop.f32.mrb[1].mxu1  ;;  %16427 = vmatmul.mubr.f32.vlgmr.msra.gmra.mrb[10].mxu1 %v18293_v54  ;;  %v8100_v19 = vsel %vm8099_vm3, %v18362_v16, -inf }
 0x263   :  { %8101 = vmax.xlane.f32.xlu0 %v8100_v19  ;;  %16430 = vmatpush3.xpose.msra.mxu1 %v18291_v53 }
 0x264   :  { %16431 = vmatprep.mubr.msk.f32.mxu1 %vm17710_vm2, %v17709_v9  ;;  %16464 = vmatprep.subr.mxu1 %v17709_v9 }
 0x265   :  { %v18354_v33 = vpop.f32.mrb[8].mxu0 }
 0x266   :  { %v16343_v13 = vpop.f32.mrb[9].mxu0  ;;  %16637 = vmatmul.mubr.f32.vlgmr.msra.gmra.mrb[18].mxu0 %v18282_v49  ;;  %v8112_v44 = vsel %vm8099_vm3, %v18354_v33, -inf }
 0x267   :  { %16640 = vmatpush3.xpose.msra.mxu0 %v18286_v52  ;;  %16641 = vmatprep.mubr.msk.f32.mxu0 %vm17710_vm2, %v17709_v9  ;;  %v6749_v52 = vsel %vm882_vm1, %v69_v50, 0 }
 0x268   :  { %16674 = vmatprep.subr.mxu0 %v17709_v9  ;;  %v6752_v53 = vand.u32 4294901760, %v6749_v52 }
 0x26a   :  { %16432 = vmatmul.mubr.f32.vlgmr.msra.gmra.mrb[10].mxu1 %v18293_v54  ;;  %v6829_v17 = vsub.f32 %v6749_v52, %v6752_v53 }
 0x26b   :  { %16465 = vmatpush3.xpose.msra.mxu1 %v4948_v11  ;;  %16466 = vmatprep.mubr.msk.f32.mxu1 %vm17710_vm2, %v17709_v9 }
 0x26c   :  { %16469 = vmatprep.subr.mxu1 %v17709_v9  ;;  %v6830_v60 = vand.u32 4294901760, %v6829_v17 }
 0x26e   :  { %16642 = vmatmul.mubr.f32.vlgmr.msra.gmra.mrb[18].mxu0 %v18282_v49  ;;  %16467 = vmatmul.mubr.f32.vlgmr.msra.gmra.mrb[12].mxu1 %v5017_v25  ;;  %v880_v49 = vcombine.high %v17947_v42, %v17947_v42  ;;  %v6831_v62 = vsub.f32 %v6829_v17, %v6830_v60 }
 0x26f   :  { %16676 = vmatprep.mubr.msk.f32.mxu0 %vm17710_vm2, %v17709_v9  ;;  %16470 = vmatpush3.xpose.msra.mxu1 %v5028_v23 }
 0x270   :  { %16471 = vmatprep.mubr.msk.f32.mxu1 %vm17710_vm2, %v17709_v9  ;;  %16474 = vmatprep.subr.mxu1 %v17709_v9  ;;  %v6746_v51 = vsel %vm882_vm1, %v880_v49, 0  ;;  %v6832_v0 = vand.u32 4294901760, %v6831_v62 }
 0x271   :  { %v6817_v54 = vand.u32 4294901760, %v6746_v51 }
 0x273   :  { %v6818_v57 = vsub.f32 %v6746_v51, %v6817_v54 }
 0x275   :  { %v6819_v61 = vand.u32 4294901760, %v6818_v57 }
 0x276   :  { %16472 = vmatmul.mubr.f32.vlgmr.msra.gmra.mrb[12].mxu1 %v18351_v12 }
 0x277   :  { %16475 = vmatpush3.xpose.msra.mxu1 %v5025_v14  ;;  %16476 = vmatprep.mubr.msk.f32.mxu1 %vm17710_vm2, %v17709_v9  ;;  %v6820_v63 = vsub.f32 %v6818_v57, %v6819_v61 }
 0x278   :  { %16479 = vmatprep.subr.mxu1 %v17709_v9 }
 0x279   :  { %v6821_v1 = vand.u32 4294901760, %v6820_v63 }
 0x27e   :  { %16477 = vmatmul.mubr.f32.vlgmr.msra.gmra.mrb[12].mxu1 %v5014_v15 }
 0x27f   :  { %16480 = vmatpush3.xpose.msra.mxu1 %v4948_v11  ;;  %16481 = vmatprep.mubr.msk.f32.mxu1 %vm17710_vm2, %v17709_v9 }
 0x280   :  { %16484 = vmatprep.subr.mxu1 %v17709_v9 }
 0x286   :  { %16482 = vmatmul.mubr.f32.vlgmr.msra.gmra.mrb[12].mxu1 %v5015_v24 }
 0x287   :  { %16485 = vmatpush3.xpose.msra.mxu1 %v5026_v20  ;;  %16486 = vmatprep.mubr.msk.f32.mxu1 %vm17710_vm2, %v17709_v9 }
 0x288   :  { %16489 = vmatprep.subr.mxu1 %v17709_v9 }
 0x28d   :  { %v18400_v37 = vpop.f32.mrb[2].mxu1 }
 0x28e   :  { %v16253_v38 = vpop.f32.mrb[3].mxu1  ;;  %16487 = vmatmul.mubr.f32.vlgmr.msra.gmra.mrb[12].mxu1 %v18351_v12  ;;  %v8103_v39 = vsel %vm8099_vm3, %v18400_v37, -inf }
 0x28f   :  { %16490 = vmatpush3.xpose.msra.mxu1 %v4948_v11  ;;  %8104 = vmax.xlane.f32.xlu0 %v8103_v39  ;;  %v7731_v11 = vsub.f32 %v7651_v4, %v7654_v6  ;;  %v17617_v39 = vld [vmem:[#allocation5] sm:$0xff] }
 0x290   :  { %16491 = vmatprep.mubr.msk.f32.mxu1 %vm17710_vm2, %v17709_v9  ;;  %16524 = vmatprep.subr.mxu1 %v17709_v9 }
 0x291   :  { %v18397_v34 = vpop.f32.mrb[10].mxu0  ;;  %v7732_v15 = vand.u32 4294901760, %v7731_v11 }
 0x292   :  { %v16403_v35 = vpop.f32.mrb[11].mxu0 }
 0x293   :  { %8113 = vmax.xlane.f32.xlu0 %v8112_v44  ;;  %v7733_v19 = vsub.f32 %v7731_v11, %v7732_v15  ;;  %v8118_v35 = vsel %vm8099_vm3, %v18397_v34, -inf }
 0x295   :  { %v7734_v24 = vand.u32 4294901760, %v7733_v19 }
 0x296   :  { %16492 = vmatmul.mubr.f32.vlgmr.msra.gmra.mrb[12].mxu1 %v18351_v12  ;;  %v7720_v12 = vsub.f32 %v7648_v5, %v7719_v7 }
 0x297   :  { %16525 = vmatpush3.xpose.msra.mxu1 %v5850_v31  ;;  %16526 = vmatprep.mubr.msk.f32.mxu1 %vm17710_vm2, %v17709_v9 }
 0x298   :  { %16529 = vmatprep.subr.mxu1 %v17709_v9  ;;  %v7721_v18 = vand.u32 4294901760, %v7720_v12 }
 0x29a   :  { %16527 = vmatmul.mubr.f32.vlgmr.msra.gmra.mrb[14].mxu1 %v5919_v48  ;;  %v7722_v20 = vsub.f32 %v7720_v12, %v7721_v18 }
 0x29b   :  { %16530 = vmatpush3.xpose.msra.mxu1 %v5930_v47  ;;  %16531 = vmatprep.mubr.msk.f32.mxu1 %vm17710_vm2, %v17709_v9 }
 0x29c   :  { %16534 = vmatprep.subr.mxu1 %v17709_v9  ;;  %v7723_v22 = vand.u32 4294901760, %v7722_v20 }
 0x2a2   :  { %16532 = vmatmul.mubr.f32.vlgmr.msra.gmra.mrb[14].mxu1 %v18394_v32 }
 0x2a3   :  { %16535 = vmatpush3.xpose.msra.mxu1 %v5927_v36  ;;  %16536 = vmatprep.mubr.msk.f32.mxu1 %vm17710_vm2, %v17709_v9 }
 0x2a4   :  { %16539 = vmatprep.subr.mxu1 %v17709_v9 }
 0x2aa   :  { %16537 = vmatmul.mubr.f32.vlgmr.msra.gmra.mrb[14].mxu1 %v5916_v28 }
 0x2ab   :  { %16540 = vmatpush3.xpose.msra.mxu1 %v5850_v31  ;;  %16541 = vmatprep.mubr.msk.f32.mxu1 %vm17710_vm2, %v17709_v9 }
 0x2ac   :  { %16544 = vmatprep.subr.mxu1 %v17709_v9 }
 0x2b2   :  { %16542 = vmatmul.mubr.f32.vlgmr.msra.gmra.mrb[14].mxu1 %v5917_v43 }
 0x2b3   :  { %16545 = vmatpush3.xpose.msra.mxu1 %v5928_v40  ;;  %16546 = vmatprep.mubr.msk.f32.mxu1 %vm17710_vm2, %v17709_v9  ;;  %v18504_v40 = vand.u32 4294901760, %v17617_v39 }
 0x2b4   :  { %16549 = vmatprep.subr.mxu1 %v17709_v9 }
 0x2b5   :  { %16675 = vmatpush3.msra.mxu0 %v18504_v40 }
 0x2b6   :  { %16679 = vmatprep.subr.mxu0 %v17709_v9 }
 0x2b9   :  { %v18433_v42 = vpop.f32.mrb[4].mxu1 }
 0x2ba   :  { %v16283_v58 = vpop.f32.mrb[5].mxu1  ;;  %16547 = vmatmul.mubr.f32.vlgmr.msra.gmra.mrb[14].mxu1 %v18394_v32  ;;  %v8106_v59 = vsel %vm8099_vm3, %v18433_v42, -inf }
 0x2bb   :  { %16550 = vmatpush3.xpose.msra.mxu1 %v5850_v31  ;;  %8107 = vmax.xlane.f32.xlu1 %v8106_v59 }
 0x2bc   :  { %16551 = vmatprep.mubr.msk.f32.mxu1 %vm17710_vm2, %v17709_v9  ;;  %16584 = vmatprep.subr.mxu1 %v17709_v9 }
 0x2bd   :  { %v18431_v55 = vpop.f32.mrb[12].mxu0 }
 0x2be   :  { %v16463_v56 = vpop.f32.mrb[13].mxu0  ;;  %v8124_v49 = vsel %vm8099_vm3, %v18431_v55, -inf }
 0x2c2   :  { %16552 = vmatmul.mubr.f32.vlgmr.msra.gmra.mrb[14].mxu1 %v18394_v32 }
 0x2c3   :  { %16585 = vmatpush3.xpose.msra.mxu1 %v6752_v53  ;;  %16586 = vmatprep.mubr.msk.f32.mxu1 %vm17710_vm2, %v17709_v9 }
 0x2c4   :  { %16589 = vmatprep.subr.mxu1 %v17709_v9 }
 0x2c6   :  { %16587 = vmatmul.mubr.f32.vlgmr.msra.gmra.mrb[16].mxu1 %v6821_v1 }
 0x2c7   :  { %16590 = vmatpush3.xpose.msra.mxu1 %v6832_v0  ;;  %16591 = vmatprep.mubr.msk.f32.mxu1 %vm17710_vm2, %v17709_v9 }
 0x2c8   :  { %16594 = vmatprep.subr.mxu1 %v17709_v9 }
 0x2ce   :  { %16592 = vmatmul.mubr.f32.vlgmr.msra.gmra.mrb[16].mxu1 %v6817_v54 }
 0x2cf   :  { %16595 = vmatpush3.xpose.msra.mxu1 %v6829_v17  ;;  %16596 = vmatprep.mubr.msk.f32.mxu1 %vm17710_vm2, %v17709_v9 }
 0x2d0   :  { %16599 = vmatprep.subr.mxu1 %v17709_v9 }
 0x2d6   :  { %16597 = vmatmul.mubr.f32.vlgmr.msra.gmra.mrb[16].mxu1 %v6818_v57 }
 0x2d7   :  { %16600 = vmatpush3.xpose.msra.mxu1 %v6752_v53  ;;  %16601 = vmatprep.mubr.msk.f32.mxu1 %vm17710_vm2, %v17709_v9 }
 0x2d8   :  { %16604 = vmatprep.subr.mxu1 %v17709_v9 }
 0x2de   :  { %16602 = vmatmul.mubr.f32.vlgmr.msra.gmra.mrb[16].mxu1 %v6819_v61 }
 0x2df   :  { %16605 = vmatpush3.xpose.msra.mxu1 %v6830_v60  ;;  %16606 = vmatprep.mubr.msk.f32.mxu1 %vm17710_vm2, %v17709_v9 }
 0x2e0   :  { %16609 = vmatprep.subr.mxu1 %v17709_v9 }
 0x2e5   :  { %v18463_v41 = vpop.f32.mrb[6].mxu1 }
 0x2e6   :  { %v16313_v13 = vpop.f32.mrb[7].mxu1  ;;  %16607 = vmatmul.mubr.f32.vlgmr.msra.gmra.mrb[16].mxu1 %v6817_v54  ;;  %v8109_v14 = vsel %vm8099_vm3, %v18463_v41, -inf }
 0x2e7   :  { %16610 = vmatpush3.xpose.msra.mxu1 %v6752_v53  ;;  %8110 = vmax.xlane.f32.xlu1 %v8109_v14  ;;  %v18521_v53 = vld [vmem:[#allocation5 + $0x8] sm:$0xff] }
 0x2e8   :  { %16611 = vmatprep.mubr.msk.f32.mxu1 %vm17710_vm2, %v17709_v9  ;;  %16644 = vmatprep.subr.mxu1 %v17709_v9 }
 0x2e9   :  { %v18461_v8 = vpop.f32.mrb[14].mxu0 }
 0x2ea   :  { %v16523_v10 = vpop.f32.mrb[15].mxu0  ;;  %v8130_v59 = vsel %vm8099_vm3, %v18461_v8, -inf }
 0x2ee   :  { %16612 = vmatmul.mubr.f32.vlgmr.msra.gmra.mrb[16].mxu1 %v6817_v54  ;;  %v18524_v54 = vand.u32 4294901760, %v18521_v53 }
 0x2ef   :  { %16645 = vmatpush3.xpose.msra.mxu1 %v7654_v6  ;;  %16646 = vmatprep.mubr.msk.f32.mxu1 %vm17710_vm2, %v17709_v9 }
 0x2f0   :  { %v8102_v21 = vpop.xlane.xlu0 %8101  ;;  %16649 = vmatprep.subr.mxu1 %v17709_v9 }
 0x2f1   :  { %v8148_v23 = vsub.f32 %v18362_v16, %v8102_v21 }
 0x2f2   :  { %16647 = vmatmul.mubr.f32.vlgmr.msra.gmra.mrb[18].mxu1 %v7723_v22 }
 0x2f3   :  { %v8164_v25 = vmul.f32 1.442695, %v8148_v23  ;;  %16650 = vmatpush3.xpose.msra.mxu1 %v7734_v24  ;;  %16651 = vmatprep.mubr.msk.f32.mxu1 %vm17710_vm2, %v17709_v9 }
 0x2f4   :  { %16654 = vmatprep.subr.mxu1 %v17709_v9 }
 0x2f5   :  { %17553 = vpow2.f32 %v8164_v25 }
 0x2fa   :  { %16652 = vmatmul.mubr.f32.vlgmr.msra.gmra.mrb[18].mxu1 %v7719_v7 }
 0x2fb   :  { %16655 = vmatpush3.xpose.msra.mxu1 %v7731_v11  ;;  %16656 = vmatprep.mubr.msk.f32.mxu1 %vm17710_vm2, %v17709_v9  ;;  %v8358_v11 = vsub.f32 %v17617_v39, %v18504_v40 }
 0x2fc   :  { %16659 = vmatprep.subr.mxu1 %v17709_v9 }
 0x2ff   :  { %v18480_v26 = vpop.eup %17553 }
 0x300   :  { %v8196_v16 = vsel %vm8099_vm3, %v18480_v26, 0.0 }
 0x301   :  { %8197 = vadd.xlane.f32.xlu1 %v8196_v16 }
 0x302   :  { %16657 = vmatmul.mubr.f32.vlgmr.msra.gmra.mrb[18].mxu1 %v7720_v12 }
 0x303   :  { %16660 = vmatpush3.xpose.msra.mxu1 %v7654_v6  ;;  %16661 = vmatprep.mubr.msk.f32.mxu1 %vm17710_vm2, %v17709_v9 }
 0x304   :  { %16664 = vmatprep.subr.mxu1 %v17709_v9 }
 0x30a   :  { %16662 = vmatmul.mubr.f32.vlgmr.msra.gmra.mrb[18].mxu1 %v7721_v18 }
 0x30b   :  { %16665 = vmatpush3.xpose.msra.mxu1 %v7732_v15  ;;  %16666 = vmatprep.mubr.msk.f32.mxu1 %vm17710_vm2, %v17709_v9  ;;  %v8359_v15 = vand.u32 4294901760, %v8358_v11 }
 0x30c   :  { %16669 = vmatprep.subr.mxu1 %v17709_v9 }
 0x30d   :  { %v8360_v24 = vsub.f32 %v8358_v11, %v8359_v15 }
 0x30f   :  { %v8361_v16 = vand.u32 4294901760, %v8360_v24 }
 0x311   :  { %v18492_v30 = vpop.f32.mrb[8].mxu1 }
 0x312   :  { %v16373_v31 = vpop.f32.mrb[9].mxu1  ;;  %16667 = vmatmul.mubr.f32.vlgmr.msra.gmra.mrb[18].mxu1 %v7719_v7  ;;  %v8115_v32 = vsel %vm8099_vm3, %v18492_v30, -inf }
 0x313   :  { %16670 = vmatpush3.xpose.msra.mxu1 %v7654_v6  ;;  %8116 = vmax.xlane.f32.xlu0 %v8115_v32 }
 0x314   :  { %16671 = vmatprep.mubr.msk.f32.mxu1 %vm17710_vm2, %v17709_v9  ;;  %16704 = vmatprep.subr.mxu1 %v17709_v9 }
 0x315   :  { %v18490_v27 = vpop.f32.mrb[16].mxu0 }
 0x316   :  { %v16583_v29 = vpop.f32.mrb[17].mxu0  ;;  %v8136_v13 = vsel %vm8099_vm3, %v18490_v27, -inf }
 0x317   :  { %8119 = vmax.xlane.f32.xlu0 %v8118_v35 }
 0x31a   :  { %16672 = vmatmul.mubr.f32.vlgmr.msra.gmra.mrb[18].mxu1 %v7719_v7 }
 0x31b   :  { %16706 = vmatprep.mubr.msk.f32.mxu1 %vm17710_vm2, %v17709_v9  ;;  %16705 = vmatpush3.msra.mxu1 %v18524_v54 }
 0x31c   :  { %v8105_v36 = vpop.xlane.xlu0 %8104  ;;  %16709 = vmatprep.subr.mxu1 %v17709_v9 }
 0x31d   :  { %v8149_v28 = vsub.f32 %v18400_v37, %v8105_v36 }
 0x31f   :  { %v8166_v38 = vmul.f32 1.442695, %v8149_v28 }
 0x320   :  { %v8114_v60 = vpop.xlane.xlu0 %8113 }
 0x321   :  { %17555 = vpow2.f32 %v8166_v38  ;;  %v8152_v61 = vsub.f32 %v18354_v33, %v8114_v60 }
 0x323   :  { %v8172_v0 = vmul.f32 1.442695, %v8152_v61 }
 0x32b   :  { %v18506_v43 = vpop.eup %17555 }
 0x32c   :  { %v8199_v44 = vsel %vm8099_vm3, %v18506_v43, 0.0 }
 0x32d   :  { %8200 = vadd.xlane.f32.xlu1 %v8199_v44 }
 0x33d   :  { %v18514_v47 = vpop.f32.mrb[10].mxu1 }
 0x33e   :  { %v16433_v37 = vpop.f32.mrb[11].mxu1  ;;  %v8121_v48 = vsel %vm8099_vm3, %v18514_v47, -inf }
 0x33f   :  { %8122 = vmax.xlane.f32.xlu0 %v8121_v48 }
 0x341   :  { %v18512_v45 = vpop.f32.mrb[18].mxu0 }
 0x342   :  { %v16643_v46 = vpop.f32.mrb[19].mxu0 }
 0x343   :  { %8125 = vmax.xlane.f32.xlu0 %v8124_v49  ;;  %v8807_v46 = vsub.f32 %v18521_v53, %v18524_v54  ;;  %v8142_v49 = vsel %vm8099_vm3, %v18512_v45, -inf }
 0x348   :  { %v8108_v50 = vpop.xlane.xlu1 %8107 }
 0x349   :  { %v8150_v52 = vsub.f32 %v18433_v42, %v8108_v50 }
 0x34b   :  { %v8168_v51 = vmul.f32 1.442695, %v8150_v52  ;;  %v8808_v52 = vand.u32 4294901760, %v8807_v46 }
 0x34d   :  { %17557 = vpow2.f32 %v8168_v51 }
 0x357   :  { %v18526_v56 = vpop.eup %17557 }
 0x358   :  { %v8202_v17 = vsel %vm8099_vm3, %v18526_v56, 0.0 }
 0x359   :  { %8203 = vadd.xlane.f32.xlu1 %v8202_v17  ;;  %v8809_v17 = vsub.f32 %v8807_v46, %v8808_v52 }
 0x369   :  { %v18532_v57 = vpop.f32.mrb[12].mxu1 }
 0x36a   :  { %v16493_v42 = vpop.f32.mrb[13].mxu1  ;;  %v8127_v58 = vsel %vm8099_vm3, %v18532_v57, -inf }
 0x36b   :  { %8128 = vmax.xlane.f32.xlu0 %v8127_v58  ;;  %v17619_v42 = vld [vmem:[#allocation5 + $0x10] sm:$0xff] }
 0x36c   :  { %v18610_v58 = vand.u32 4294901760, %v17619_v42 }
 0x36f   :  { %8131 = vmax.xlane.f32.xlu0 %v8130_v59 }
 0x374   :  { %v8111_v62 = vpop.xlane.xlu1 %8110 }
 0x375   :  { %v8151_v63 = vsub.f32 %v18463_v41, %v8111_v62 }
 0x377   :  { %v8170_v1 = vmul.f32 1.442695, %v8151_v63  ;;  %v8810_v63 = vand.u32 4294901760, %v8809_v17 }
 0x379   :  { %17559 = vpow2.f32 %v8170_v1 }
 0x37a   :  { %17561 = vpow2.f32 %v8172_v0 }
 0x383   :  { %v18540_v2 = vpop.eup %17559 }
 0x384   :  { %v8205_v3 = vsel %vm8099_vm3, %v18540_v2, 0.0  ;;  %v18544_v4 = vpop.eup %17561 }
 0x385   :  { %8206 = vadd.xlane.f32.xlu1 %v8205_v3  ;;  %v8208_v5 = vsel %vm8099_vm3, %v18544_v4, 0.0 }
 0x389   :  { %8209 = vadd.xlane.f32.xlu1 %v8208_v5 }
 0x38e   :  { %v8198_v33 = vpop.xlane.xlu1 %8197 }
 0x38f   :  { %17563 = vrcp.f32 %v8198_v33 }
 0x395   :  { %v18548_v6 = vpop.f32.mrb[14].mxu1 }
 0x396   :  { %v16553_v7 = vpop.f32.mrb[15].mxu1  ;;  %v8133_v10 = vsel %vm8099_vm3, %v18548_v6, -inf }
 0x397   :  { %8134 = vmax.xlane.f32.xlu0 %v8133_v10 }
 0x399   :  { %v17564_v12 = vpop.eup %17563 }
 0x39a   :  { %v8245_v41 = vmul.f32 %v17564_v12, %v18480_v26 }
 0x39b   :  { %8137 = vmax.xlane.f32.xlu0 %v8136_v13 }
 0x39c   :  { %15615 = vst.msk [vmem:[%s19345_s5] sm:$0xf] %vm8099_vm3, %v8245_v41  ;;  %v8278_v14 = vsel %vm8276_vm4, %v8245_v41, 0  ;;  %v9256_v41 = vsub.f32 %v17619_v42, %v18610_v58 }
 0x39d   :  { %v18561_v18 = vand.u32 4294901760, %v8278_v14 }
 0x39f   :  { %v8347_v19 = vsub.f32 %v8278_v14, %v18561_v18 }
 0x3a0   :  { %v8117_v20 = vpop.xlane.xlu0 %8116 }
 0x3a1   :  { %v8153_v21 = vsub.f32 %v18492_v30, %v8117_v20  ;;  %v8348_v22 = vand.u32 4294901760, %v8347_v19 }
 0x3a3   :  { %v8174_v23 = vmul.f32 1.442695, %v8153_v21  ;;  %v8349_v25 = vsub.f32 %v8347_v19, %v8348_v22  ;;  %v17620_v21 = vld [vmem:[#allocation5 + $0x18] sm:$0xff] }
 0x3a4   :  { %v8120_v26 = vpop.xlane.xlu0 %8119 }
 0x3a5   :  { %17565 = vpow2.f32 %v8174_v23  ;;  %v8154_v29 = vsub.f32 %v18397_v34, %v8120_v26  ;;  %v8350_v31 = vand.u32 4294901760, %v8349_v25 }
 0x3a7   :  { %v8176_v32 = vmul.f32 1.442695, %v8154_v29  ;;  %16677 = vmatmul.mubr.f32.vlgmr.msra.gmra.mrb[20].mxu0 %v8350_v31 }
 0x3a8   :  { %16680 = vmatpush3.msra.mxu0 %v8361_v16  ;;  %16681 = vmatprep.mubr.msk.f32.mxu0 %vm17710_vm2, %v17709_v9 }
 0x3a9   :  { %17567 = vpow2.f32 %v8176_v32  ;;  %16684 = vmatprep.subr.mxu0 %v17709_v9 }
 0x3af   :  { %v18569_v35 = vpop.eup %17565  ;;  %16682 = vmatmul.mubr.f32.vlgmr.msra.gmra.mrb[20].mxu0 %v18561_v18 }
 0x3b0   :  { %v8211_v30 = vsel %vm8099_vm3, %v18569_v35, 0.0  ;;  %16685 = vmatpush3.msra.mxu0 %v8358_v11  ;;  %16686 = vmatprep.mubr.msk.f32.mxu0 %vm17710_vm2, %v17709_v9 }
 0x3b1   :  { %8212 = vadd.xlane.f32.xlu1 %v8211_v30  ;;  %16689 = vmatprep.subr.mxu0 %v17709_v9 }
 0x3b3   :  { %v18577_v34 = vpop.eup %17567 }
 0x3b4   :  { %v8214_v36 = vsel %vm8099_vm3, %v18577_v34, 0.0 }
 0x3b5   :  { %8215 = vadd.xlane.f32.xlu1 %v8214_v36 }
 0x3b7   :  { %16687 = vmatmul.mubr.f32.vlgmr.msra.gmra.mrb[20].mxu0 %v8347_v19 }
 0x3b8   :  { %16690 = vmatpush3.msra.mxu0 %v18504_v40  ;;  %16691 = vmatprep.mubr.msk.f32.mxu0 %vm17710_vm2, %v17709_v9 }
 0x3b9   :  { %16694 = vmatprep.subr.mxu0 %v17709_v9 }
 0x3ba   :  { %v8201_v28 = vpop.xlane.xlu1 %8200 }
 0x3bb   :  { %17569 = vrcp.f32 %v8201_v28 }
 0x3bf   :  { %16692 = vmatmul.mubr.f32.vlgmr.msra.gmra.mrb[20].mxu0 %v8348_v22  ;;  %v18660_v22 = vand.u32 4294901760, %v17620_v21 }
 0x3c0   :  { %16695 = vmatpush3.msra.mxu0 %v8359_v15  ;;  %16696 = vmatprep.mubr.msk.f32.mxu0 %vm17710_vm2, %v17709_v9 }
 0x3c1   :  { %v18587_v38 = vpop.f32.mrb[16].mxu1  ;;  %16699 = vmatprep.subr.mxu0 %v17709_v9 }
 0x3c2   :  { %v16613_v39 = vpop.f32.mrb[17].mxu1  ;;  %v8139_v44 = vsel %vm8099_vm3, %v18587_v38, -inf }
 0x3c3   :  { %8140 = vmax.xlane.f32.xlu0 %v8139_v44 }
 0x3c5   :  { %v17570_v37 = vpop.eup %17569 }
 0x3c6   :  { %v8247_v48 = vmul.f32 %v17570_v37, %v18506_v43  ;;  %v17621_v37 = vld [vmem:[#allocation5 + $0x20] sm:$0xff] }
 0x3c7   :  { %16697 = vmatmul.mubr.f32.vlgmr.msra.gmra.mrb[20].mxu0 %v18561_v18  ;;  %8143 = vmax.xlane.f32.xlu0 %v8142_v49 }
 0x3c8   :  { %15616 = vst.msk [vmem:[%s19345_s5 + $0x4] sm:$0xf] %vm8099_vm3, %v8247_v48  ;;  %16700 = vmatpush3.msra.mxu0 %v18504_v40  ;;  %16701 = vmatprep.mubr.msk.f32.mxu0 %vm17710_vm2, %v17709_v9  ;;  %v8727_v50 = vsel %vm8276_vm4, %v8247_v48, 0  ;;  %v18694_v48 = vand.u32 4294901760, %v17621_v37 }
 0x3c9   :  { %v18606_v43 = vand.u32 4294901760, %v8727_v50  ;;  %16734 = vmatprep.subr.mxu0 %v17709_v9 }
 0x3cb   :  { %v8796_v51 = vsub.f32 %v8727_v50, %v18606_v43 }
 0x3cc   :  { %v8123_v53 = vpop.xlane.xlu0 %8122 }
 0x3cd   :  { %v8155_v59 = vsub.f32 %v18514_v47, %v8123_v53  ;;  %v8797_v40 = vand.u32 4294901760, %v8796_v51 }
 0x3cf   :  { %v8178_v60 = vmul.f32 1.442695, %v8155_v59  ;;  %16702 = vmatmul.mubr.f32.vlgmr.msra.gmra.mrb[20].mxu0 %v18561_v18  ;;  %v8798_v61 = vsub.f32 %v8796_v51, %v8797_v40  ;;  %v9257_v18 = vand.u32 4294901760, %v9256_v41 }
 0x3d0   :  { %v8126_v62 = vpop.xlane.xlu0 %8125  ;;  %16735 = vmatpush3.msra.mxu0 %v18610_v58  ;;  %16736 = vmatprep.mubr.msk.f32.mxu0 %vm17710_vm2, %v17709_v9 }
 0x3d1   :  { %17571 = vpow2.f32 %v8178_v60  ;;  %v8156_v0 = vsub.f32 %v18431_v55, %v8126_v62  ;;  %v8799_v1 = vand.u32 4294901760, %v8798_v61  ;;  %16739 = vmatprep.subr.mxu0 %v17709_v9  ;;  %v9258_v24 = vsub.f32 %v9256_v41, %v9257_v18 }
 0x3d3   :  { %v8180_v3 = vmul.f32 1.442695, %v8156_v0  ;;  %16707 = vmatmul.mubr.f32.vlgmr.msra.gmra.mrb[20].mxu1 %v8799_v1  ;;  %v9259_v29 = vand.u32 4294901760, %v9258_v24  ;;  %v17622_v24 = vld [vmem:[#allocation5 + $0x28] sm:$0xff] }
 0x3d4   :  { %16710 = vmatpush3.msra.mxu1 %v8810_v63  ;;  %16711 = vmatprep.mubr.msk.f32.mxu1 %vm17710_vm2, %v17709_v9 }
 0x3d5   :  { %17573 = vpow2.f32 %v8180_v3  ;;  %16714 = vmatprep.subr.mxu1 %v17709_v9 }
 0x3db   :  { %v18622_v47 = vpop.eup %17571  ;;  %16712 = vmatmul.mubr.f32.vlgmr.msra.gmra.mrb[20].mxu1 %v18606_v43 }
 0x3dc   :  { %v8217_v5 = vsel %vm8099_vm3, %v18622_v47, 0.0  ;;  %16715 = vmatpush3.msra.mxu1 %v8807_v46  ;;  %16716 = vmatprep.mubr.msk.f32.mxu1 %vm17710_vm2, %v17709_v9  ;;  %v18692_v46 = vsub.f32 %v17620_v21, %v18660_v22  ;;  %v18773_v21 = vand.u32 4294901760, %v17622_v24 }
 0x3dd   :  { %8218 = vadd.xlane.f32.xlu1 %v8217_v5  ;;  %16719 = vmatprep.subr.mxu1 %v17709_v9 }
 0x3df   :  { %v18630_v55 = vpop.eup %17573 }
 0x3e0   :  { %v8220_v33 = vsel %vm8099_vm3, %v18630_v55, 0.0 }
 0x3e1   :  { %8221 = vadd.xlane.f32.xlu1 %v8220_v33 }
 0x3e3   :  { %16717 = vmatmul.mubr.f32.vlgmr.msra.gmra.mrb[20].mxu1 %v8796_v51  ;;  %v18708_v51 = vsub.f32 %v17621_v37, %v18694_v48 }
 0x3e4   :  { %16720 = vmatpush3.msra.mxu1 %v18524_v54  ;;  %16721 = vmatprep.mubr.msk.f32.mxu1 %vm17710_vm2, %v17709_v9 }
 0x3e5   :  { %16724 = vmatprep.subr.mxu1 %v17709_v9  ;;  %v10155_v60 = vand.u32 4294901760, %v18708_v51 }
 0x3e6   :  { %v8204_v7 = vpop.xlane.xlu1 %8203 }
 0x3e7   :  { %17575 = vrcp.f32 %v8204_v7 }
 0x3eb   :  { %16722 = vmatmul.mubr.f32.vlgmr.msra.gmra.mrb[20].mxu1 %v8797_v40 }
 0x3ec   :  { %16725 = vmatpush3.msra.mxu1 %v8808_v52  ;;  %16726 = vmatprep.mubr.msk.f32.mxu1 %vm17710_vm2, %v17709_v9 }
 0x3ed   :  { %v18640_v10 = vpop.f32.mrb[18].mxu1  ;;  %16729 = vmatprep.subr.mxu1 %v17709_v9 }
 0x3ee   :  { %v16673_v11 = vpop.f32.mrb[19].mxu1  ;;  %v8145_v12 = vsel %vm8099_vm3, %v18640_v10, -inf }
 0x3ef   :  { %8146 = vmax.xlane.f32.xlu0 %v8145_v12 }
 0x3f1   :  { %v17576_v13 = vpop.eup %17575 }
 0x3f2   :  { %v8249_v14 = vmul.f32 %v17576_v13, %v18526_v56 }
 0x3f3   :  { %16727 = vmatmul.mubr.f32.vlgmr.msra.gmra.mrb[20].mxu1 %v18606_v43 }
 0x3f4   :  { %15617 = vst.msk [vmem:[%s19345_s5 + $0x8] sm:$0xf] %vm8099_vm3, %v8249_v14  ;;  %16730 = vmatpush3.msra.mxu1 %v18524_v54  ;;  %16731 = vmatprep.mubr.msk.f32.mxu1 %vm17710_vm2, %v17709_v9  ;;  %v9176_v15 = vsel %vm8276_vm4, %v8249_v14, 0 }
 0x3f5   :  { %v18656_v19 = vand.u32 4294901760, %v9176_v15  ;;  %16764 = vmatprep.subr.mxu1 %v17709_v9 }
 0x3f7   :  { %v9245_v56 = vsub.f32 %v9176_v15, %v18656_v19 }
 0x3f8   :  { %v8129_v20 = vpop.xlane.xlu0 %8128 }
 0x3f9   :  { %v8157_v23 = vsub.f32 %v18532_v57, %v8129_v20  ;;  %v9246_v54 = vand.u32 4294901760, %v9245_v56 }
 0x3fb   :  { %v8182_v25 = vmul.f32 1.442695, %v8157_v23  ;;  %16732 = vmatmul.mubr.f32.vlgmr.msra.gmra.mrb[20].mxu1 %v18606_v43  ;;  %v9247_v26 = vsub.f32 %v9245_v56, %v9246_v54  ;;  %v9706_v43 = vand.u32 4294901760, %v18692_v46  ;;  %v18781_v23 = vsub.f32 %v17622_v24, %v18773_v21 }
 0x3fc   :  { %v8132_v16 = vpop.xlane.xlu0 %8131  ;;  %16765 = vmatpush3.msra.mxu1 %v18660_v22  ;;  %16766 = vmatprep.mubr.msk.f32.mxu1 %vm17710_vm2, %v17709_v9 }
 0x3fd   :  { %17577 = vpow2.f32 %v8182_v25  ;;  %v8158_v31 = vsub.f32 %v18461_v8, %v8132_v16  ;;  %v9248_v32 = vand.u32 4294901760, %v9247_v26  ;;  %16769 = vmatprep.subr.mxu1 %v17709_v9  ;;  %v9707_v59 = vsub.f32 %v18692_v46, %v9706_v43 }
 0x3ff   :  { %v8184_v30 = vmul.f32 1.442695, %v8158_v31  ;;  %16737 = vmatmul.mubr.f32.vlgmr.msra.gmra.mrb[22].mxu0 %v9248_v32  ;;  %v9708_v5 = vand.u32 4294901760, %v9707_v59  ;;  %v10604_v31 = vand.u32 4294901760, %v18781_v23 }
 0x400   :  { %16740 = vmatpush3.msra.mxu0 %v9259_v29  ;;  %16741 = vmatprep.mubr.msk.f32.mxu0 %vm17710_vm2, %v17709_v9 }
 0x401   :  { %17579 = vpow2.f32 %v8184_v30  ;;  %16744 = vmatprep.subr.mxu0 %v17709_v9 }
 0x407   :  { %v18672_v57 = vpop.eup %17577  ;;  %16742 = vmatmul.mubr.f32.vlgmr.msra.gmra.mrb[22].mxu0 %v18656_v19 }
 0x408   :  { %v8223_v36 = vsel %vm8099_vm3, %v18672_v57, 0.0  ;;  %16745 = vmatpush3.msra.mxu0 %v9256_v41  ;;  %16746 = vmatprep.mubr.msk.f32.mxu0 %vm17710_vm2, %v17709_v9 }
 0x409   :  { %8224 = vadd.xlane.f32.xlu1 %v8223_v36  ;;  %16749 = vmatprep.subr.mxu0 %v17709_v9 }
 0x40b   :  { %v18680_v8 = vpop.eup %17579 }
 0x40c   :  { %v8226_v28 = vsel %vm8099_vm3, %v18680_v8, 0.0 }
 0x40d   :  { %8227 = vadd.xlane.f32.xlu1 %v8226_v28 }
 0x40f   :  { %16747 = vmatmul.mubr.f32.vlgmr.msra.gmra.mrb[22].mxu0 %v9245_v56 }
 0x410   :  { %16750 = vmatpush3.msra.mxu0 %v18610_v58  ;;  %16751 = vmatprep.mubr.msk.f32.mxu0 %vm17710_vm2, %v17709_v9 }
 0x411   :  { %16754 = vmatprep.subr.mxu0 %v17709_v9 }
 0x412   :  { %v8207_v39 = vpop.xlane.xlu1 %8206 }
 0x413   :  { %17581 = vrcp.f32 %v8207_v39 }
 0x416   :  { %v8210_v44 = vpop.xlane.xlu1 %8209 }
 0x417   :  { %17583 = vrcp.f32 %v8210_v44  ;;  %16752 = vmatmul.mubr.f32.vlgmr.msra.gmra.mrb[22].mxu0 %v9246_v54  ;;  %v17623_v54 = vld [vmem:[#allocation5 + $0x30] sm:$0xff] }
 0x418   :  { %16755 = vmatpush3.msra.mxu0 %v9257_v18  ;;  %16756 = vmatprep.mubr.msk.f32.mxu0 %vm17710_vm2, %v17709_v9  ;;  %v18783_v25 = vand.u32 4294901760, %v17623_v54 }
 0x419   :  { %16759 = vmatprep.subr.mxu0 %v17709_v9 }
 0x41a   :  { %v18798_v32 = vsub.f32 %v17623_v54, %v18783_v25 }
 0x41c   :  { %v11053_v44 = vand.u32 4294901760, %v18798_v32 }
 0x41d   :  { %v17582_v49 = vpop.eup %17581 }
 0x41e   :  { %v8251_v50 = vmul.f32 %v17582_v49, %v18540_v2 }
 0x41f   :  { %16757 = vmatmul.mubr.f32.vlgmr.msra.gmra.mrb[22].mxu0 %v18656_v19 }
 0x420   :  { %15618 = vst.msk [vmem:[%s19345_s5 + $0xc] sm:$0xf] %vm8099_vm3, %v8251_v50  ;;  %16760 = vmatpush3.msra.mxu0 %v18610_v58  ;;  %16761 = vmatprep.mubr.msk.f32.mxu0 %vm17710_vm2, %v17709_v9  ;;  %v9625_v52 = vsel %vm8276_vm4, %v8251_v50, 0 }
 0x421   :  { %v17584_v2 = vpop.eup %17583  ;;  %v18710_v53 = vand.u32 4294901760, %v9625_v52  ;;  %16794 = vmatprep.subr.mxu0 %v17709_v9 }
 0x422   :  { %v8253_v17 = vmul.f32 %v17584_v2, %v18544_v4 }
 0x423   :  { %v9694_v42 = vsub.f32 %v9625_v52, %v18710_v53 }
 0x424   :  { %15619 = vst.msk [vmem:[%s19345_s5 + $0x10] sm:$0xf] %vm8099_vm3, %v8253_v17  ;;  %v8135_v58 = vpop.xlane.xlu0 %8134  ;;  %v10074_v40 = vsel %vm8276_vm4, %v8253_v17, 0 }
 0x425   :  { %v8159_v61 = vsub.f32 %v18548_v6, %v8135_v58  ;;  %v9695_v62 = vand.u32 4294901760, %v9694_v42  ;;  %v18725_v4 = vand.u32 4294901760, %v10074_v40  ;;  %v10156_v6 = vsub.f32 %v18708_v51, %v10155_v60 }
 0x427   :  { %v8186_v63 = vmul.f32 1.442695, %v8159_v61  ;;  %16762 = vmatmul.mubr.f32.vlgmr.msra.gmra.mrb[22].mxu0 %v18656_v19  ;;  %v9696_v0 = vsub.f32 %v9694_v42, %v9695_v62  ;;  %v10143_v1 = vsub.f32 %v10074_v40, %v18725_v4  ;;  %v10157_v13 = vand.u32 4294901760, %v10156_v6 }
 0x428   :  { %v8138_v3 = vpop.xlane.xlu0 %8137  ;;  %16795 = vmatpush3.msra.mxu0 %v18694_v48  ;;  %16796 = vmatprep.mubr.msk.f32.mxu0 %vm17710_vm2, %v17709_v9 }
 0x429   :  { %17585 = vpow2.f32 %v8186_v63  ;;  %v8160_v33 = vsub.f32 %v18490_v27, %v8138_v3  ;;  %v9697_v7 = vand.u32 4294901760, %v9696_v0  ;;  %v10144_v11 = vand.u32 4294901760, %v10143_v1  ;;  %16799 = vmatprep.subr.mxu0 %v17709_v9  ;;  %v17624_v0 = vld [vmem:[#allocation5 + $0x38] sm:$0xff] }
 0x42b   :  { %v8188_v12 = vmul.f32 1.442695, %v8160_v33  ;;  %16767 = vmatmul.mubr.f32.vlgmr.msra.gmra.mrb[22].mxu1 %v9697_v7  ;;  %v10145_v41 = vsub.f32 %v10143_v1, %v10144_v11 }
 0x42c   :  { %16770 = vmatpush3.msra.mxu1 %v9708_v5  ;;  %16771 = vmatprep.mubr.msk.f32.mxu1 %vm17710_vm2, %v17709_v9  ;;  %v17625_v5 = vld [vmem:[#allocation5 + $0x40] sm:$0xff] }
 0x42d   :  { %17587 = vpow2.f32 %v8188_v12  ;;  %v10146_v14 = vand.u32 4294901760, %v10145_v41  ;;  %16774 = vmatprep.subr.mxu1 %v17709_v9  ;;  %v18888_v6 = vand.u32 4294901760, %v17625_v5 }
 0x42f   :  { %16797 = vmatmul.mubr.f32.vlgmr.msra.gmra.mrb[24].mxu0 %v10146_v14  ;;  %v18903_v41 = vsub.f32 %v17625_v5, %v18888_v6 }
 0x430   :  { %16800 = vmatpush3.msra.mxu0 %v10157_v13  ;;  %16801 = vmatprep.mubr.msk.f32.mxu0 %vm17710_vm2, %v17709_v9 }
 0x431   :  { %16804 = vmatprep.subr.mxu0 %v17709_v9 }
 0x433   :  { %v18743_v27 = vpop.eup %17585  ;;  %16772 = vmatmul.mubr.f32.vlgmr.msra.gmra.mrb[22].mxu1 %v18710_v53 }
 0x434   :  { %16775 = vmatpush3.msra.mxu1 %v18692_v46  ;;  %v8229_v15 = vsel %vm8099_vm3, %v18743_v27, 0.0  ;;  %16776 = vmatprep.mubr.msk.f32.mxu1 %vm17710_vm2, %v17709_v9 }
 0x435   :  { %8230 = vadd.xlane.f32.xlu1 %v8229_v15  ;;  %16779 = vmatprep.subr.mxu1 %v17709_v9 }
 0x437   :  { %v18752_v18 = vpop.eup %17587  ;;  %16802 = vmatmul.mubr.f32.vlgmr.msra.gmra.mrb[24].mxu0 %v18725_v4 }
 0x438   :  { %v8232_v19 = vsel %vm8099_vm3, %v18752_v18, 0.0  ;;  %16805 = vmatpush3.msra.mxu0 %v18708_v51  ;;  %16806 = vmatprep.mubr.msk.f32.mxu0 %vm17710_vm2, %v17709_v9  ;;  %v11054_v51 = vsub.f32 %v18798_v32, %v11053_v44 }
 0x439   :  { %8233 = vadd.xlane.f32.xlu0 %v8232_v19  ;;  %16809 = vmatprep.subr.mxu0 %v17709_v9 }
 0x43a   :  { %v11055_v59 = vand.u32 4294901760, %v11054_v51 }
 0x43b   :  { %16777 = vmatmul.mubr.f32.vlgmr.msra.gmra.mrb[22].mxu1 %v9694_v42 }
 0x43c   :  { %16780 = vmatpush3.msra.mxu1 %v18660_v22  ;;  %16781 = vmatprep.mubr.msk.f32.mxu1 %vm17710_vm2, %v17709_v9 }
 0x43d   :  { %16784 = vmatprep.subr.mxu1 %v17709_v9 }
 0x43e   :  { %v8213_v56 = vpop.xlane.xlu1 %8212 }
 0x43f   :  { %17589 = vrcp.f32 %v8213_v56  ;;  %16807 = vmatmul.mubr.f32.vlgmr.msra.gmra.mrb[24].mxu0 %v10143_v1  ;;  %v18878_v1 = vand.u32 4294901760, %v17624_v0 }
 0x440   :  { %16810 = vmatpush3.msra.mxu0 %v18694_v48  ;;  %16811 = vmatprep.mubr.msk.f32.mxu0 %vm17710_vm2, %v17709_v9 }
 0x441   :  { %16814 = vmatprep.subr.mxu0 %v17709_v9  ;;  %v18886_v3 = vsub.f32 %v17624_v0, %v18878_v1 }
 0x442   :  { %v8216_v20 = vpop.xlane.xlu1 %8215 }
 0x443   :  { %17591 = vrcp.f32 %v8216_v20  ;;  %16782 = vmatmul.mubr.f32.vlgmr.msra.gmra.mrb[22].mxu1 %v9695_v62  ;;  %v11502_v12 = vand.u32 4294901760, %v18886_v3  ;;  %v11951_v20 = vand.u32 4294901760, %v18903_v41 }
 0x444   :  { %16785 = vmatpush3.msra.mxu1 %v9706_v43  ;;  %16786 = vmatprep.mubr.msk.f32.mxu1 %vm17710_vm2, %v17709_v9 }
 0x445   :  { %16789 = vmatprep.subr.mxu1 %v17709_v9  ;;  %v11503_v56 = vsub.f32 %v18886_v3, %v11502_v12 }
 0x447   :  { %16812 = vmatmul.mubr.f32.vlgmr.msra.gmra.mrb[24].mxu0 %v10144_v11 }
 0x448   :  { %16815 = vmatpush3.msra.mxu0 %v10155_v60  ;;  %16816 = vmatprep.mubr.msk.f32.mxu0 %vm17710_vm2, %v17709_v9 }
 0x449   :  { %v17590_v26 = vpop.eup %17589  ;;  %16819 = vmatprep.subr.mxu0 %v17709_v9 }
 0x44a   :  { %v8255_v16 = vmul.f32 %v17590_v26, %v18569_v35 }
 0x44b   :  { %16787 = vmatmul.mubr.f32.vlgmr.msra.gmra.mrb[22].mxu1 %v18710_v53 }
 0x44c   :  { %15620 = vst.msk [vmem:[%s19345_s5 + $0x14] sm:$0xf] %vm8099_vm3, %v8255_v16  ;;  %16790 = vmatpush3.msra.mxu1 %v18660_v22  ;;  %16791 = vmatprep.mubr.msk.f32.mxu1 %vm17710_vm2, %v17709_v9  ;;  %v10523_v29 = vsel %vm8276_vm4, %v8255_v16, 0  ;;  %v11504_v16 = vand.u32 4294901760, %v11503_v56 }
 0x44d   :  { %v17592_v35 = vpop.eup %17591  ;;  %16824 = vmatprep.subr.mxu1 %v17709_v9  ;;  %v18801_v30 = vand.u32 4294901760, %v10523_v29 }
 0x44e   :  { %v8257_v36 = vmul.f32 %v17592_v35, %v18577_v34  ;;  %v10605_v34 = vsub.f32 %v18781_v23, %v10604_v31 }
 0x44f   :  { %16817 = vmatmul.mubr.f32.vlgmr.msra.gmra.mrb[24].mxu0 %v18725_v4  ;;  %v18806_v22 = vsub.f32 %v10523_v29, %v18801_v30  ;;  %v11952_v29 = vsub.f32 %v18903_v41, %v11951_v20 }
 0x450   :  { %15621 = vst.msk [vmem:[%s19345_s5 + $0x18] sm:$0xf] %vm8099_vm3, %v8257_v36  ;;  %v8141_v28 = vpop.xlane.xlu0 %8140  ;;  %16820 = vmatpush3.msra.mxu0 %v18694_v48  ;;  %16821 = vmatprep.mubr.msk.f32.mxu0 %vm17710_vm2, %v17709_v9  ;;  %v10972_v39 = vsel %vm8276_vm4, %v8257_v36, 0 }
 0x451   :  { %v8161_v46 = vsub.f32 %v18587_v38, %v8141_v28  ;;  %v10593_v37 = vand.u32 4294901760, %v18806_v22  ;;  %16854 = vmatprep.subr.mxu0 %v17709_v9  ;;  %v18823_v49 = vand.u32 4294901760, %v10972_v39  ;;  %v10606_v38 = vand.u32 4294901760, %v10605_v34 }
 0x452   :  { %v11953_v35 = vand.u32 4294901760, %v11952_v29 }
 0x453   :  { %v8190_v48 = vmul.f32 1.442695, %v8161_v46  ;;  %16792 = vmatmul.mubr.f32.vlgmr.msra.gmra.mrb[22].mxu1 %v18710_v53  ;;  %v10594_v50 = vsub.f32 %v18806_v22, %v10593_v37  ;;  %v11041_v52 = vsub.f32 %v10972_v39, %v18823_v49  ;;  %v17626_v39 = vld [vmem:[#allocation5 + $0x48] sm:$0xff] }
 0x454   :  { %16825 = vmatpush3.msra.mxu1 %v18773_v21  ;;  %v8144_v43 = vpop.xlane.xlu0 %8143  ;;  %16826 = vmatprep.mubr.msk.f32.mxu1 %vm17710_vm2, %v17709_v9 }
 0x455   :  { %17593 = vpow2.f32 %v8190_v48  ;;  %v8162_v2 = vsub.f32 %v18512_v45, %v8144_v43  ;;  %v10595_v17 = vand.u32 4294901760, %v10594_v50  ;;  %16829 = vmatprep.subr.mxu1 %v17709_v9  ;;  %v11042_v53 = vand.u32 4294901760, %v11041_v52 }
 0x457   :  { %v8192_v42 = vmul.f32 1.442695, %v8162_v2  ;;  %16822 = vmatmul.mubr.f32.vlgmr.msra.gmra.mrb[24].mxu0 %v18725_v4  ;;  %16827 = vmatmul.mubr.f32.vlgmr.msra.gmra.mrb[24].mxu1 %v10595_v17  ;;  %v11043_v58 = vsub.f32 %v11041_v52, %v11042_v53 }
 0x458   :  { %16830 = vmatpush3.msra.mxu1 %v10606_v38  ;;  %16855 = vmatpush3.msra.mxu0 %v18783_v25 }
 0x459   :  { %17595 = vpow2.f32 %v8192_v42  ;;  %16856 = vmatprep.mubr.msk.f32.mxu0 %vm17710_vm2, %v17709_v9  ;;  %v11044_v40 = vand.u32 4294901760, %v11043_v58  ;;  %16831 = vmatprep.mubr.msk.f32.mxu1 %vm17710_vm2, %v17709_v9 }
 0x45a   :  { %16834 = vmatprep.subr.mxu1 %v17709_v9  ;;  %16859 = vmatprep.subr.mxu0 %v17709_v9 }
 0x45b   :  { %16857 = vmatmul.mubr.f32.vlgmr.msra.gmra.mrb[26].mxu0 %v11044_v40 }
 0x45c   :  { %16860 = vmatpush3.msra.mxu0 %v11055_v59  ;;  %16861 = vmatprep.mubr.msk.f32.mxu0 %vm17710_vm2, %v17709_v9 }
 0x45d   :  { %16864 = vmatprep.subr.mxu0 %v17709_v9 }
 0x45f   :  { %v18847_v45 = vpop.eup %17593  ;;  %16832 = vmatmul.mubr.f32.vlgmr.msra.gmra.mrb[24].mxu1 %v18801_v30 }
 0x460   :  { %16835 = vmatpush3.msra.mxu1 %v18781_v23  ;;  %v8235_v60 = vsel %vm8099_vm3, %v18847_v45, 0.0  ;;  %16836 = vmatprep.mubr.msk.f32.mxu1 %vm17710_vm2, %v17709_v9 }
 0x461   :  { %8236 = vadd.xlane.f32.xlu1 %v8235_v60  ;;  %16839 = vmatprep.subr.mxu1 %v17709_v9 }
 0x463   :  { %v18856_v61 = vpop.eup %17595  ;;  %16862 = vmatmul.mubr.f32.vlgmr.msra.gmra.mrb[26].mxu0 %v18823_v49 }
 0x464   :  { %v8238_v62 = vsel %vm8099_vm3, %v18856_v61, 0.0  ;;  %16865 = vmatpush3.msra.mxu0 %v18798_v32  ;;  %16866 = vmatprep.mubr.msk.f32.mxu0 %vm17710_vm2, %v17709_v9 }
 0x465   :  { %8239 = vadd.xlane.f32.xlu0 %v8238_v62  ;;  %16869 = vmatprep.subr.mxu0 %v17709_v9 }
 0x467   :  { %16837 = vmatmul.mubr.f32.vlgmr.msra.gmra.mrb[24].mxu1 %v18806_v22 }
 0x468   :  { %16840 = vmatpush3.msra.mxu1 %v18773_v21  ;;  %16841 = vmatprep.mubr.msk.f32.mxu1 %vm17710_vm2, %v17709_v9 }
 0x469   :  { %16844 = vmatprep.subr.mxu1 %v17709_v9 }
 0x46a   :  { %v8219_v4 = vpop.xlane.xlu1 %8218 }
 0x46b   :  { %17597 = vrcp.f32 %v8219_v4  ;;  %16867 = vmatmul.mubr.f32.vlgmr.msra.gmra.mrb[26].mxu0 %v11041_v52 }
 0x46c   :  { %16870 = vmatpush3.msra.mxu0 %v18783_v25  ;;  %16871 = vmatprep.mubr.msk.f32.mxu0 %vm17710_vm2, %v17709_v9 }
 0x46d   :  { %16874 = vmatprep.subr.mxu0 %v17709_v9 }
 0x46e   :  { %v8222_v63 = vpop.xlane.xlu1 %8221 }
 0x46f   :  { %17599 = vrcp.f32 %v8222_v63  ;;  %16842 = vmatmul.mubr.f32.vlgmr.msra.gmra.mrb[24].mxu1 %v10593_v37  ;;  %v17627_v37 = vld [vmem:[#allocation5 + $0x50] sm:$0xff] }
 0x470   :  { %16845 = vmatpush3.msra.mxu1 %v10604_v31  ;;  %16846 = vmatprep.mubr.msk.f32.mxu1 %vm17710_vm2, %v17709_v9 }
 0x471   :  { %16849 = vmatprep.subr.mxu1 %v17709_v9 }
 0x473   :  { %16872 = vmatmul.mubr.f32.vlgmr.msra.gmra.mrb[26].mxu0 %v11042_v53 }
 0x474   :  { %16875 = vmatpush3.msra.mxu0 %v11053_v44  ;;  %16876 = vmatprep.mubr.msk.f32.mxu0 %vm17710_vm2, %v17709_v9  ;;  %v18971_v44 = vand.u32 4294901760, %v17626_v39 }
 0x475   :  { %v17598_v33 = vpop.eup %17597  ;;  %16879 = vmatprep.subr.mxu0 %v17709_v9 }
 0x476   :  { %v8259_v7 = vmul.f32 %v17598_v33, %v18622_v47  ;;  %v18977_v46 = vsub.f32 %v17626_v39, %v18971_v44 }
 0x477   :  { %16847 = vmatmul.mubr.f32.vlgmr.msra.gmra.mrb[24].mxu1 %v18801_v30 }
 0x478   :  { %15622 = vst.msk [vmem:[%s19345_s5 + $0x1c] sm:$0xf] %vm8099_vm3, %v8259_v7  ;;  %16850 = vmatpush3.msra.mxu1 %v18773_v21  ;;  %16851 = vmatprep.mubr.msk.f32.mxu1 %vm17710_vm2, %v17709_v9  ;;  %v11421_v11 = vsel %vm8276_vm4, %v8259_v7, 0  ;;  %v12400_v51 = vand.u32 4294901760, %v18977_v46 }
 0x479   :  { %v17600_v47 = vpop.eup %17599  ;;  %16884 = vmatprep.subr.mxu1 %v17709_v9  ;;  %v18906_v13 = vand.u32 4294901760, %v11421_v11 }
 0x47a   :  { %v8261_v14 = vmul.f32 %v17600_v47, %v18630_v55  ;;  %v12401_v58 = vsub.f32 %v18977_v46, %v12400_v51  ;;  %v17628_v47 = vld [vmem:[#allocation5 + $0x58] sm:$0xff] }
 0x47b   :  { %16877 = vmatmul.mubr.f32.vlgmr.msra.gmra.mrb[26].mxu0 %v18823_v49  ;;  %v11490_v15 = vsub.f32 %v11421_v11, %v18906_v13 }
 0x47c   :  { %15623 = vst.msk [vmem:[%s19345_s5 + $0x20] sm:$0xf] %vm8099_vm3, %v8261_v14  ;;  %v8147_v19 = vpop.xlane.xlu0 %8146  ;;  %16880 = vmatpush3.msra.mxu0 %v18783_v25  ;;  %16881 = vmatprep.mubr.msk.f32.mxu0 %vm17710_vm2, %v17709_v9  ;;  %v11870_v55 = vsel %vm8276_vm4, %v8261_v14, 0  ;;  %v12402_v63 = vand.u32 4294901760, %v12401_v58 }
 0x47d   :  { %v8163_v24 = vsub.f32 %v18640_v10, %v8147_v19  ;;  %v11491_v21 = vand.u32 4294901760, %v11490_v15  ;;  %16914 = vmatprep.subr.mxu0 %v17709_v9  ;;  %v18925_v23 = vand.u32 4294901760, %v11870_v55  ;;  %v17629_v19 = vld [vmem:[#allocation5 + $0x60] sm:$0xff] }
 0x47e   :  { %v19069_v56 = vand.u32 4294901760, %v17629_v19 }
 0x47f   :  { %v8194_v54 = vmul.f32 1.442695, %v8163_v24  ;;  %16852 = vmatmul.mubr.f32.vlgmr.msra.gmra.mrb[24].mxu1 %v18801_v30  ;;  %v11492_v25 = vsub.f32 %v11490_v15, %v11491_v21  ;;  %v11939_v26 = vsub.f32 %v11870_v55, %v18925_v23 }
 0x480   :  { %16885 = vmatpush3.msra.mxu1 %v18878_v1  ;;  %16886 = vmatprep.mubr.msk.f32.mxu1 %vm17710_vm2, %v17709_v9 }
 0x481   :  { %17601 = vpow2.f32 %v8194_v54  ;;  %v11493_v10 = vand.u32 4294901760, %v11492_v25  ;;  %16889 = vmatprep.subr.mxu1 %v17709_v9  ;;  %v11940_v31 = vand.u32 4294901760, %v11939_v26 }
 0x483   :  { %16882 = vmatmul.mubr.f32.vlgmr.msra.gmra.mrb[26].mxu0 %v18823_v49  ;;  %16887 = vmatmul.mubr.f32.vlgmr.msra.gmra.mrb[26].mxu1 %v11493_v10  ;;  %v11941_v32 = vsub.f32 %v11939_v26, %v11940_v31  ;;  %v18979_v49 = vand.u32 4294901760, %v17627_v37 }
 0x484   :  { %16890 = vmatpush3.msra.mxu1 %v11504_v16  ;;  %16915 = vmatpush3.msra.mxu0 %v18888_v6  ;;  %v19085_v16 = vsub.f32 %v17629_v19, %v19069_v56 }
 0x485   :  { %16916 = vmatprep.mubr.msk.f32.mxu0 %vm17710_vm2, %v17709_v9  ;;  %v11942_v30 = vand.u32 4294901760, %v11941_v32  ;;  %16891 = vmatprep.mubr.msk.f32.mxu1 %vm17710_vm2, %v17709_v9 }
 0x486   :  { %16894 = vmatprep.subr.mxu1 %v17709_v9  ;;  %16919 = vmatprep.subr.mxu0 %v17709_v9 }
 0x487   :  { %16917 = vmatmul.mubr.f32.vlgmr.msra.gmra.mrb[28].mxu0 %v11942_v30 }
 0x488   :  { %16920 = vmatpush3.msra.mxu0 %v11953_v35  ;;  %16921 = vmatprep.mubr.msk.f32.mxu0 %vm17710_vm2, %v17709_v9 }
 0x489   :  { %16924 = vmatprep.subr.mxu0 %v17709_v9 }
 0x48b   :  { %v18945_v36 = vpop.eup %17601  ;;  %16892 = vmatmul.mubr.f32.vlgmr.msra.gmra.mrb[26].mxu1 %v18906_v13 }
 0x48c   :  { %16895 = vmatpush3.msra.mxu1 %v18886_v3  ;;  %v8241_v22 = vsel %vm8099_vm3, %v18945_v36, 0.0  ;;  %16896 = vmatprep.mubr.msk.f32.mxu1 %vm17710_vm2, %v17709_v9 }
 0x48d   :  { %8242 = vadd.xlane.f32.xlu1 %v8241_v22  ;;  %16899 = vmatprep.subr.mxu1 %v17709_v9 }
 0x48f   :  { %16922 = vmatmul.mubr.f32.vlgmr.msra.gmra.mrb[28].mxu0 %v18925_v23 }
 0x490   :  { %16925 = vmatpush3.msra.mxu0 %v18903_v41  ;;  %16926 = vmatprep.mubr.msk.f32.mxu0 %vm17710_vm2, %v17709_v9 }
 0x491   :  { %16929 = vmatprep.subr.mxu0 %v17709_v9 }
 0x493   :  { %16897 = vmatmul.mubr.f32.vlgmr.msra.gmra.mrb[26].mxu1 %v11490_v15 }
 0x494   :  { %16900 = vmatpush3.msra.mxu1 %v18878_v1  ;;  %16901 = vmatprep.mubr.msk.f32.mxu1 %vm17710_vm2, %v17709_v9 }
 0x495   :  { %16904 = vmatprep.subr.mxu1 %v17709_v9 }
 0x496   :  { %v8225_v28 = vpop.xlane.xlu1 %8224 }
 0x497   :  { %17603 = vrcp.f32 %v8225_v28  ;;  %16927 = vmatmul.mubr.f32.vlgmr.msra.gmra.mrb[28].mxu0 %v11939_v26 }
 0x498   :  { %16930 = vmatpush3.msra.mxu0 %v18888_v6  ;;  %16931 = vmatprep.mubr.msk.f32.mxu0 %vm17710_vm2, %v17709_v9 }
 0x499   :  { %16934 = vmatprep.subr.mxu0 %v17709_v9 }
 0x49a   :  { %v8228_v34 = vpop.xlane.xlu1 %8227 }
 0x49b   :  { %17605 = vrcp.f32 %v8228_v34  ;;  %16902 = vmatmul.mubr.f32.vlgmr.msra.gmra.mrb[26].mxu1 %v11491_v21  ;;  %v13747_v34 = vand.u32 4294901760, %v19085_v16 }
 0x49c   :  { %16905 = vmatpush3.msra.mxu1 %v11502_v12  ;;  %16906 = vmatprep.mubr.msk.f32.mxu1 %vm17710_vm2, %v17709_v9 }
 0x49d   :  { %16909 = vmatprep.subr.mxu1 %v17709_v9 }
 0x49f   :  { %16932 = vmatmul.mubr.f32.vlgmr.msra.gmra.mrb[28].mxu0 %v11940_v31 }
 0x4a0   :  { %16935 = vmatpush3.msra.mxu0 %v11951_v20  ;;  %16936 = vmatprep.mubr.msk.f32.mxu0 %vm17710_vm2, %v17709_v9 }
 0x4a1   :  { %v17604_v48 = vpop.eup %17603  ;;  %16939 = vmatprep.subr.mxu0 %v17709_v9 }
 0x4a2   :  { %v8263_v50 = vmul.f32 %v17604_v48, %v18672_v57  ;;  %v18983_v52 = vpop.f32.mrb[20].mxu0  ;;  %v18996_v57 = vsub.f32 %v17627_v37, %v18979_v49 }
 0x4a3   :  { %v16703_v43 = vpop.f32.mrb[21].mxu0  ;;  %16907 = vmatmul.mubr.f32.vlgmr.msra.gmra.mrb[26].mxu1 %v18906_v13  ;;  %v15462_v11 = vsel %vm15461_vm5, %v18983_v52, 0.0 }
 0x4a4   :  { %15624 = vst.msk [vmem:[%s19345_s5 + $0x24] sm:$0xf] %vm8099_vm3, %v8263_v50  ;;  %16910 = vmatpush3.msra.mxu1 %v18878_v1  ;;  %16911 = vmatprep.mubr.msk.f32.mxu1 %vm17710_vm2, %v17709_v9  ;;  %v12319_v38 = vsel %vm8276_vm4, %v8263_v50, 0  ;;  %v12849_v59 = vand.u32 4294901760, %v18996_v57  ;;  %v15463_v12 = vrot.slane %v15462_v11, 4  ;;  %v13748_v43 = vsub.f32 %v19085_v16, %v13747_v34 }
 0x4a5   :  { %v17606_v2 = vpop.eup %17605  ;;  %16944 = vmatprep.subr.mxu1 %v17709_v9  ;;  %v18999_v17 = vand.u32 4294901760, %v12319_v38 }
 0x4a6   :  { %v8265_v53 = vmul.f32 %v17606_v2, %v18680_v8  ;;  %v12850_v0 = vsub.f32 %v18996_v57, %v12849_v59  ;;  %v15464_v14 = vadd.f32 %v15463_v12, %v15462_v11 }
 0x4a7   :  { %16937 = vmatmul.mubr.f32.vlgmr.msra.gmra.mrb[28].mxu0 %v18925_v23  ;;  %v12388_v42 = vsub.f32 %v12319_v38, %v18999_v17 }
 0x4a8   :  { %15625 = vst.msk [vmem:[%s19345_s5 + $0x28] sm:$0xf] %vm8099_vm3, %v8265_v53  ;;  %16940 = vmatpush3.msra.mxu0 %v18888_v6  ;;  %16941 = vmatprep.mubr.msk.f32.mxu0 %vm17710_vm2, %v17709_v9  ;;  %v12768_v8 = vsel %vm8276_vm4, %v8265_v53, 0  ;;  %v12851_v6 = vand.u32 4294901760, %v12850_v0  ;;  %v15465_v20 = vrot.slane %v15464_v14, 2 }
 0x4a9   :  { %v12389_v40 = vand.u32 4294901760, %v12388_v42  ;;  %16974 = vmatprep.subr.mxu0 %v17709_v9  ;;  %v19017_v60 = vand.u32 4294901760, %v12768_v8 }
 0x4aa   :  { %v15466_v31 = vadd.f32 %v15465_v20, %v15464_v14 }
 0x4ab   :  { %16912 = vmatmul.mubr.f32.vlgmr.msra.gmra.mrb[26].mxu1 %v18906_v13  ;;  %v12390_v62 = vsub.f32 %v12388_v42, %v12389_v40  ;;  %v12837_v4 = vsub.f32 %v12768_v8, %v19017_v60  ;;  %v19061_v13 = vand.u32 4294901760, %v17628_v47 }
 0x4ac   :  { %16945 = vmatpush3.msra.mxu1 %v18971_v44  ;;  %16946 = vmatprep.mubr.msk.f32.mxu1 %vm17710_vm2, %v17709_v9 }
 0x4ad   :  { %v12391_v1 = vand.u32 4294901760, %v12390_v62  ;;  %16949 = vmatprep.subr.mxu1 %v17709_v9  ;;  %v12838_v3 = vand.u32 4294901760, %v12837_v4  ;;  %v19067_v15 = vsub.f32 %v17628_v47, %v19061_v13 }
 0x4af   :  { %16942 = vmatmul.mubr.f32.vlgmr.msra.gmra.mrb[28].mxu0 %v18925_v23  ;;  %16947 = vmatmul.mubr.f32.vlgmr.msra.gmra.mrb[28].mxu1 %v12391_v1  ;;  %v12839_v5 = vsub.f32 %v12837_v4, %v12838_v3 }
 0x4b0   :  { %16950 = vmatpush3.msra.mxu1 %v12402_v63  ;;  %16975 = vmatpush3.msra.mxu0 %v18979_v49 }
 0x4b1   :  { %16976 = vmatprep.mubr.msk.f32.mxu0 %vm17710_vm2, %v17709_v9  ;;  %v12840_v33 = vand.u32 4294901760, %v12839_v5  ;;  %16951 = vmatprep.mubr.msk.f32.mxu1 %vm17710_vm2, %v17709_v9 }
 0x4b2   :  { %16954 = vmatprep.subr.mxu1 %v17709_v9  ;;  %16979 = vmatprep.subr.mxu0 %v17709_v9 }
 0x4b3   :  { %16977 = vmatmul.mubr.f32.vlgmr.msra.gmra.mrb[30].mxu0 %v12840_v33 }
 0x4b4   :  { %16980 = vmatpush3.msra.mxu0 %v12851_v6  ;;  %16981 = vmatprep.mubr.msk.f32.mxu0 %vm17710_vm2, %v17709_v9 }
 0x4b5   :  { %16984 = vmatprep.subr.mxu0 %v17709_v9 }
 0x4b7   :  { %16952 = vmatmul.mubr.f32.vlgmr.msra.gmra.mrb[28].mxu1 %v18999_v17 }
 0x4b8   :  { %16955 = vmatpush3.msra.mxu1 %v18977_v46  ;;  %16956 = vmatprep.mubr.msk.f32.mxu1 %vm17710_vm2, %v17709_v9  ;;  %v15467_v46 = vrot.slane %v15466_v31, 1 }
 0x4b9   :  { %16959 = vmatprep.subr.mxu1 %v17709_v9 }
 0x4bb   :  { %16982 = vmatmul.mubr.f32.vlgmr.msra.gmra.mrb[30].mxu0 %v19017_v60 }
 0x4bc   :  { %16985 = vmatpush3.msra.mxu0 %v18996_v57  ;;  %16986 = vmatprep.mubr.msk.f32.mxu0 %vm17710_vm2, %v17709_v9  ;;  %v15468_v57 = vadd.f32 %v15467_v46, %v15466_v31 }
 0x4bd   :  { %16989 = vmatprep.subr.mxu0 %v17709_v9 }
 0x4bf   :  { %16957 = vmatmul.mubr.f32.vlgmr.msra.gmra.mrb[28].mxu1 %v12388_v42  ;;  %v13749_v42 = vand.u32 4294901760, %v13748_v43 }
 0x4c0   :  { %16960 = vmatpush3.msra.mxu1 %v18971_v44  ;;  %16961 = vmatprep.mubr.msk.f32.mxu1 %vm17710_vm2, %v17709_v9 }
 0x4c1   :  { %16964 = vmatprep.subr.mxu1 %v17709_v9 }
 0x4c2   :  { %v8231_v7 = vpop.xlane.xlu1 %8230 }
 0x4c3   :  { %17607 = vrcp.f32 %v8231_v7  ;;  %16987 = vmatmul.mubr.f32.vlgmr.msra.gmra.mrb[30].mxu0 %v12837_v4  ;;  %v17631_v4 = vld [vmem:[#allocation5 + $0x70] sm:$0xff] }
 0x4c4   :  { %16990 = vmatpush3.msra.mxu0 %v18979_v49  ;;  %16991 = vmatprep.mubr.msk.f32.mxu0 %vm17710_vm2, %v17709_v9  ;;  %v19164_v63 = vand.u32 4294901760, %v17631_v4 }
 0x4c5   :  { %16994 = vmatprep.subr.mxu0 %v17709_v9 }
 0x4c6   :  { %v8234_v41 = vpop.xlane.xlu0 %8233  ;;  %v19180_v11 = vsub.f32 %v17631_v4, %v19164_v63 }
 0x4c7   :  { %17609 = vrcp.f32 %v8234_v41  ;;  %16962 = vmatmul.mubr.f32.vlgmr.msra.gmra.mrb[28].mxu1 %v12389_v40  ;;  %v17630_v40 = vld [vmem:[#allocation5 + $0x68] sm:$0xff] }
 0x4c8   :  { %16965 = vmatpush3.msra.mxu1 %v12400_v51  ;;  %16966 = vmatprep.mubr.msk.f32.mxu1 %vm17710_vm2, %v17709_v9 }
 0x4c9   :  { %16969 = vmatprep.subr.mxu1 %v17709_v9 }
 0x4cb   :  { %16992 = vmatmul.mubr.f32.vlgmr.msra.gmra.mrb[30].mxu0 %v12838_v3 }
 0x4cc   :  { %16995 = vmatpush3.msra.mxu0 %v12849_v59  ;;  %16996 = vmatprep.mubr.msk.f32.mxu0 %vm17710_vm2, %v17709_v9 }
 0x4cd   :  { %v17608_v55 = vpop.eup %17607  ;;  %16999 = vmatprep.subr.mxu0 %v17709_v9 }
 0x4ce   :  { %v8267_v24 = vmul.f32 %v17608_v55, %v18743_v27  ;;  %v9171_v21 = vpop.f32.mrb[20].mxu1  ;;  %v13298_v27 = vand.u32 4294901760, %v19067_v15  ;;  %v14645_v55 = vand.u32 4294901760, %v19180_v11 }
 0x4cf   :  { %v15469_v23 = vsel %vm15461_vm5, %v9171_v21, 0.0  ;;  %v16733_v54 = vpop.f32.mrb[21].mxu1  ;;  %16967 = vmatmul.mubr.f32.vlgmr.msra.gmra.mrb[28].mxu1 %v18999_v17 }
 0x4d0   :  { %15626 = vst.msk [vmem:[%s19345_s5 + $0x2c] sm:$0xf] %vm8099_vm3, %v8267_v24  ;;  %v15470_v25 = vrot.slane %v15469_v23, 4  ;;  %16970 = vmatpush3.msra.mxu1 %v18971_v44  ;;  %16971 = vmatprep.mubr.msk.f32.mxu1 %vm17710_vm2, %v17709_v9  ;;  %v13217_v26 = vsel %vm8276_vm4, %v8267_v24, 0 }
 0x4d1   :  { %v17610_v29 = vpop.eup %17609  ;;  %17004 = vmatprep.subr.mxu1 %v17709_v9  ;;  %v19088_v10 = vand.u32 4294901760, %v13217_v26 }
 0x4d2   :  { %v8269_v32 = vmul.f32 %v17610_v29, %v18752_v18  ;;  %v15471_v35 = vadd.f32 %v15470_v25, %v15469_v23  ;;  %v13299_v18 = vsub.f32 %v19067_v15, %v13298_v27 }
 0x4d3   :  { %16997 = vmatmul.mubr.f32.vlgmr.msra.gmra.mrb[30].mxu0 %v19017_v60  ;;  %v19093_v30 = vsub.f32 %v13217_v26, %v19088_v10  ;;  %v14646_v26 = vsub.f32 %v19180_v11, %v14645_v55 }
 0x4d4   :  { %15627 = vst.msk [vmem:[%s19345_s5 + $0x30] sm:$0xf] %vm8099_vm3, %v8269_v32  ;;  %v15472_v22 = vrot.slane %v15471_v35, 2  ;;  %17000 = vmatpush3.msra.mxu0 %v18979_v49  ;;  %17001 = vmatprep.mubr.msk.f32.mxu0 %vm17710_vm2, %v17709_v9  ;;  %v13666_v28 = vsel %vm8276_vm4, %v8269_v32, 0  ;;  %v13300_v52 = vand.u32 4294901760, %v13299_v18 }
 0x4d5   :  { %v13287_v39 = vand.u32 4294901760, %v19093_v30  ;;  %17034 = vmatprep.subr.mxu0 %v17709_v9  ;;  %v19109_v44 = vand.u32 4294901760, %v13666_v28  ;;  %v14647_v32 = vand.u32 4294901760, %v14646_v26 }
 0x4d6   :  { %v15473_v37 = vadd.f32 %v15472_v22, %v15471_v35  ;;  %v17632_v22 = vld [vmem:[#allocation5 + $0x78] sm:$0xff] }
 0x4d7   :  { %16972 = vmatmul.mubr.f32.vlgmr.msra.gmra.mrb[28].mxu1 %v18999_v17  ;;  %v13288_v49 = vsub.f32 %v19093_v30, %v13287_v39  ;;  %v13735_v48 = vsub.f32 %v13666_v28, %v19109_v44  ;;  %v19247_v18 = vand.u32 4294901760, %v17632_v22 }
 0x4d8   :  { %v15474_v50 = vrot.slane %v15473_v37, 1  ;;  %17005 = vmatpush3.msra.mxu1 %v19061_v13  ;;  %17006 = vmatprep.mubr.msk.f32.mxu1 %vm17710_vm2, %v17709_v9 }
 0x4d9   :  { %v13289_v38 = vand.u32 4294901760, %v13288_v49  ;;  %17009 = vmatprep.subr.mxu1 %v17709_v9  ;;  %v13736_v51 = vand.u32 4294901760, %v13735_v48  ;;  %v15093_v28 = vsub.f32 %v17632_v22, %v19247_v18 }
 0x4da   :  { %v15475_v2 = vadd.f32 %v15474_v50, %v15473_v37 }
 0x4db   :  { %17002 = vmatmul.mubr.f32.vlgmr.msra.gmra.mrb[30].mxu0 %v19017_v60  ;;  %17007 = vmatmul.mubr.f32.vlgmr.msra.gmra.mrb[30].mxu1 %v13289_v38  ;;  %v13737_v17 = vsub.f32 %v13735_v48, %v13736_v51  ;;  %v19156_v60 = vand.u32 4294901760, %v17630_v40 }
 0x4dc   :  { %v19121_v53 = vsel %vm15590_vm6, %v15475_v2, %v15468_v57  ;;  %17010 = vmatpush3.msra.mxu1 %v13300_v52  ;;  %17035 = vmatpush3.msra.mxu0 %v19069_v56 }
 0x4dd   :  { %17036 = vmatprep.mubr.msk.f32.mxu0 %vm17710_vm2, %v17709_v9  ;;  %v13738_v58 = vand.u32 4294901760, %v13737_v17  ;;  %17011 = vmatprep.mubr.msk.f32.mxu1 %vm17710_vm2, %v17709_v9  ;;  %v19162_v62 = vsub.f32 %v17630_v40, %v19156_v60 }
 0x4de   :  { %17014 = vmatprep.subr.mxu1 %v17709_v9  ;;  %17039 = vmatprep.subr.mxu0 %v17709_v9 }
 0x4df   :  { %17037 = vmatmul.mubr.f32.vlgmr.msra.gmra.mrb[32].mxu0 %v13738_v58 }
 0x4e0   :  { %17040 = vmatpush3.msra.mxu0 %v13749_v42  ;;  %17041 = vmatprep.mubr.msk.f32.mxu0 %vm17710_vm2, %v17709_v9 }
 0x4e1   :  { %17044 = vmatprep.subr.mxu0 %v17709_v9 }
 0x4e3   :  { %17012 = vmatmul.mubr.f32.vlgmr.msra.gmra.mrb[30].mxu1 %v19088_v10 }
 0x4e4   :  { %17015 = vmatpush3.msra.mxu1 %v19067_v15  ;;  %17016 = vmatprep.mubr.msk.f32.mxu1 %vm17710_vm2, %v17709_v9 }
 0x4e5   :  { %17019 = vmatprep.subr.mxu1 %v17709_v9 }
 0x4e7   :  { %17042 = vmatmul.mubr.f32.vlgmr.msra.gmra.mrb[32].mxu0 %v19109_v44 }
 0x4e8   :  { %17045 = vmatpush3.msra.mxu0 %v19085_v16  ;;  %17046 = vmatprep.mubr.msk.f32.mxu0 %vm17710_vm2, %v17709_v9 }
 0x4e9   :  { %17049 = vmatprep.subr.mxu0 %v17709_v9 }
 0x4eb   :  { %17017 = vmatmul.mubr.f32.vlgmr.msra.gmra.mrb[30].mxu1 %v19093_v30 }
 0x4ec   :  { %17020 = vmatpush3.msra.mxu1 %v19061_v13  ;;  %17021 = vmatprep.mubr.msk.f32.mxu1 %vm17710_vm2, %v17709_v9 }
 0x4ed   :  { %17024 = vmatprep.subr.mxu1 %v17709_v9 }
 0x4ee   :  { %v8237_v8 = vpop.xlane.xlu1 %8236 }
 0x4ef   :  { %17611 = vrcp.f32 %v8237_v8  ;;  %17047 = vmatmul.mubr.f32.vlgmr.msra.gmra.mrb[32].mxu0 %v13735_v48 }
 0x4f0   :  { %17050 = vmatpush3.msra.mxu0 %v19069_v56  ;;  %17051 = vmatprep.mubr.msk.f32.mxu0 %vm17710_vm2, %v17709_v9 }
 0x4f1   :  { %17054 = vmatprep.subr.mxu0 %v17709_v9 }
 0x4f2   :  { %v8240_v59 = vpop.xlane.xlu0 %8239 }
 0x4f3   :  { %17613 = vrcp.f32 %v8240_v59  ;;  %17022 = vmatmul.mubr.f32.vlgmr.msra.gmra.mrb[30].mxu1 %v13287_v39 }
 0x4f4   :  { %17025 = vmatpush3.msra.mxu1 %v13298_v27  ;;  %17026 = vmatprep.mubr.msk.f32.mxu1 %vm17710_vm2, %v17709_v9 }
 0x4f5   :  { %17029 = vmatprep.subr.mxu1 %v17709_v9 }
 0x4f7   :  { %17052 = vmatmul.mubr.f32.vlgmr.msra.gmra.mrb[32].mxu0 %v13736_v51 }
 0x4f8   :  { %17055 = vmatpush3.msra.mxu0 %v13747_v34  ;;  %17056 = vmatprep.mubr.msk.f32.mxu0 %vm17710_vm2, %v17709_v9 }
 0x4f9   :  { %v17612_v0 = vpop.eup %17611  ;;  %17059 = vmatprep.subr.mxu0 %v17709_v9 }
 0x4fa   :  { %v8271_v1 = vmul.f32 %v17612_v0, %v18847_v45  ;;  %v9620_v3 = vpop.f32.mrb[22].mxu0  ;;  %v14196_v45 = vand.u32 4294901760, %v19162_v62 }
 0x4fb   :  { %v15476_v5 = vsel %vm15461_vm5, %v9620_v3, 0.0  ;;  %v16763_v6 = vpop.f32.mrb[23].mxu0  ;;  %17027 = vmatmul.mubr.f32.vlgmr.msra.gmra.mrb[30].mxu1 %v19088_v10 }
 0x4fc   :  { %15628 = vst.msk [vmem:[%s19345_s5 + $0x34] sm:$0xf] %vm8099_vm3, %v8271_v1  ;;  %v15477_v33 = vrot.slane %v15476_v5, 4  ;;  %17030 = vmatpush3.msra.mxu1 %v19061_v13  ;;  %17031 = vmatprep.mubr.msk.f32.mxu1 %vm17710_vm2, %v17709_v9  ;;  %v14115_v7 = vsel %vm8276_vm4, %v8271_v1, 0 }
 0x4fd   :  { %v17614_v12 = vpop.eup %17613  ;;  %17064 = vmatprep.subr.mxu1 %v17709_v9  ;;  %v19183_v41 = vand.u32 4294901760, %v14115_v7 }
 0x4fe   :  { %v8273_v47 = vmul.f32 %v17614_v12, %v18856_v61  ;;  %v15478_v14 = vadd.f32 %v15477_v33, %v15476_v5  ;;  %v14197_v61 = vsub.f32 %v19162_v62, %v14196_v45 }
 0x4ff   :  { %17057 = vmatmul.mubr.f32.vlgmr.msra.gmra.mrb[32].mxu0 %v19109_v44  ;;  %v14184_v13 = vsub.f32 %v14115_v7, %v19183_v41 }
 0x500   :  { %v14564_v15 = vsel %vm8276_vm4, %v8273_v47, 0  ;;  %15629 = vst.msk [vmem:[%s19345_s5 + $0x38] sm:$0xf] %vm8099_vm3, %v8273_v47  ;;  %v15479_v19 = vrot.slane %v15478_v14, 2  ;;  %17060 = vmatpush3.msra.mxu0 %v19069_v56  ;;  %17061 = vmatprep.mubr.msk.f32.mxu0 %vm17710_vm2, %v17709_v9  ;;  %v14198_v25 = vand.u32 4294901760, %v14197_v61 }
 0x501   :  { %v19200_v20 = vand.u32 4294901760, %v14564_v15  ;;  %v14185_v24 = vand.u32 4294901760, %v14184_v13  ;;  %17094 = vmatprep.subr.mxu0 %v17709_v9 }
 0x502   :  { %v15480_v21 = vadd.f32 %v15479_v19, %v15478_v14 }
 0x503   :  { %17032 = vmatmul.mubr.f32.vlgmr.msra.gmra.mrb[30].mxu1 %v19088_v10  ;;  %v14186_v23 = vsub.f32 %v14184_v13, %v14185_v24  ;;  %v14633_v56 = vsub.f32 %v14564_v15, %v19200_v20 }
 0x504   :  { %v15481_v54 = vrot.slane %v15480_v21, 1  ;;  %17065 = vmatpush3.msra.mxu1 %v19156_v60  ;;  %17066 = vmatprep.mubr.msk.f32.mxu1 %vm17710_vm2, %v17709_v9 }
 0x505   :  { %v14187_v27 = vand.u32 4294901760, %v14186_v23  ;;  %17069 = vmatprep.subr.mxu1 %v17709_v9  ;;  %v14634_v16 = vand.u32 4294901760, %v14633_v56 }
 0x506   :  { %v15482_v29 = vadd.f32 %v15481_v54, %v15480_v21 }
 0x507   :  { %17062 = vmatmul.mubr.f32.vlgmr.msra.gmra.mrb[32].mxu0 %v19109_v44  ;;  %17067 = vmatmul.mubr.f32.vlgmr.msra.gmra.mrb[32].mxu1 %v14187_v27  ;;  %v14635_v10 = vsub.f32 %v14633_v56, %v14634_v16 }
 0x508   :  { %v19213_v31 = vsel %vm15592_vm7, %v15482_v29, %v19121_v53  ;;  %17070 = vmatpush3.msra.mxu1 %v14198_v25  ;;  %17095 = vmatpush3.msra.mxu0 %v19164_v63 }
 0x509   :  { %17096 = vmatprep.mubr.msk.f32.mxu0 %vm17710_vm2, %v17709_v9  ;;  %v14636_v35 = vand.u32 4294901760, %v14635_v10  ;;  %17071 = vmatprep.mubr.msk.f32.mxu1 %vm17710_vm2, %v17709_v9 }
 0x50a   :  { %17074 = vmatprep.subr.mxu1 %v17709_v9  ;;  %17099 = vmatprep.subr.mxu0 %v17709_v9 }
 0x50b   :  { %17097 = vmatmul.mubr.f32.vlgmr.msra.gmra.mrb[34].mxu0 %v14636_v35 }
 0x50c   :  { %17100 = vmatpush3.msra.mxu0 %v14647_v32  ;;  %17101 = vmatprep.mubr.msk.f32.mxu0 %vm17710_vm2, %v17709_v9 }
 0x50d   :  { %17104 = vmatprep.subr.mxu0 %v17709_v9 }
 0x50f   :  { %17072 = vmatmul.mubr.f32.vlgmr.msra.gmra.mrb[32].mxu1 %v19183_v41 }
 0x510   :  { %17075 = vmatpush3.msra.mxu1 %v19162_v62  ;;  %17076 = vmatprep.mubr.msk.f32.mxu1 %vm17710_vm2, %v17709_v9 }
 0x511   :  { %17079 = vmatprep.subr.mxu1 %v17709_v9 }
 0x513   :  { %17102 = vmatmul.mubr.f32.vlgmr.msra.gmra.mrb[34].mxu0 %v19200_v20 }
 0x514   :  { %17105 = vmatpush3.msra.mxu0 %v19180_v11  ;;  %17106 = vmatprep.mubr.msk.f32.mxu0 %vm17710_vm2, %v17709_v9 }
 0x515   :  { %17109 = vmatprep.subr.mxu0 %v17709_v9 }
 0x517   :  { %17077 = vmatmul.mubr.f32.vlgmr.msra.gmra.mrb[32].mxu1 %v14184_v13 }
 0x518   :  { %17080 = vmatpush3.msra.mxu1 %v19156_v60  ;;  %17081 = vmatprep.mubr.msk.f32.mxu1 %vm17710_vm2, %v17709_v9 }
 0x519   :  { %17084 = vmatprep.subr.mxu1 %v17709_v9 }
 0x51a   :  { %v8243_v30 = vpop.xlane.xlu1 %8242 }
 0x51b   :  { %17615 = vrcp.f32 %v8243_v30  ;;  %17107 = vmatmul.mubr.f32.vlgmr.msra.gmra.mrb[34].mxu0 %v14633_v56 }
 0x51c   :  { %17110 = vmatpush3.msra.mxu0 %v19164_v63  ;;  %17111 = vmatprep.mubr.msk.f32.mxu0 %vm17710_vm2, %v17709_v9 }
 0x51d   :  { %17114 = vmatprep.subr.mxu0 %v17709_v9 }
 0x51f   :  { %17082 = vmatmul.mubr.f32.vlgmr.msra.gmra.mrb[32].mxu1 %v14185_v24 }
 0x520   :  { %17085 = vmatpush3.msra.mxu1 %v14196_v45  ;;  %17086 = vmatprep.mubr.msk.f32.mxu1 %vm17710_vm2, %v17709_v9 }
 0x521   :  { %17089 = vmatprep.subr.mxu1 %v17709_v9 }
 0x523   :  { %17112 = vmatmul.mubr.f32.vlgmr.msra.gmra.mrb[34].mxu0 %v14634_v16 }
 0x524   :  { %17115 = vmatpush3.msra.mxu0 %v14645_v55  ;;  %17116 = vmatprep.mubr.msk.f32.mxu0 %vm17710_vm2, %v17709_v9 }
 0x525   :  { %v17616_v34 = vpop.eup %17615  ;;  %17119 = vmatprep.subr.mxu0 %v17709_v9 }
 0x526   :  { %v8275_v39 = vmul.f32 %v17616_v34, %v18945_v36  ;;  %v10069_v44 = vpop.f32.mrb[22].mxu1  ;;  %v15094_v36 = vand.u32 4294901760, %v15093_v28 }
 0x527   :  { %v15483_v46 = vsel %vm15461_vm5, %v10069_v44, 0.0  ;;  %v16793_v37 = vpop.f32.mrb[23].mxu1  ;;  %17087 = vmatmul.mubr.f32.vlgmr.msra.gmra.mrb[32].mxu1 %v19183_v41 }
 0x528   :  { %v15013_v49 = vsel %vm8276_vm4, %v8275_v39, 0  ;;  %15630 = vst.msk [vmem:[%s19345_s5 + $0x3c] sm:$0xf] %vm8099_vm3, %v8275_v39  ;;  %v15484_v48 = vrot.slane %v15483_v46, 4  ;;  %17090 = vmatpush3.msra.mxu1 %v19156_v60  ;;  %17091 = vmatprep.mubr.msk.f32.mxu1 %vm17710_vm2, %v17709_v9  ;;  %v15095_v53 = vsub.f32 %v15093_v28, %v15094_v36  ;;  %s17711_s5 = smov [#allocation7]  }
 0x529   :  { %v19265_v50 = vand.u32 4294901760, %v15013_v49  ;;  %17124 = vmatprep.subr.mxu1 %v17709_v9  ;;  %s15636_s26 = sshll.u32 %s17711_s5, 4  ;;  %s15637_s26 = int_to_ptr.vmem [resolvable:$true] %s15636_s26 }
 0x52a   :  { %v15485_v52 = vadd.f32 %v15484_v48, %v15483_v46  ;;  %v10518_v43 = vpop.f32.mrb[24].mxu0  ;;  %v15096_v62 = vand.u32 4294901760, %v15095_v53  ;;  %s17677_s27 = scalar_lea.vmem %s15637_s26, 256  ;;  %p17682_p3 = scmp.lt.s32.totalorder %s15637_s26, %s15637_s26 }
 0x52b   :  { %v15490_v38 = vsel %vm15461_vm5, %v10518_v43, 0.0  ;;  %v16823_v51 = vpop.f32.mrb[25].mxu0  ;;  %17117 = vmatmul.mubr.f32.vlgmr.msra.gmra.mrb[34].mxu0 %v19200_v20  ;;  %v15082_v57 = vsub.f32 %v15013_v49, %v19265_v50  ;;  %p17678_p2 = scmp.ne.s32.totalorder %s15637_s26, %s17677_s27  ;;  %p17683_p4 = scmp.lt.s32.totalorder %s17677_s27, %s17677_s27 }
 0x52c   :  { %v15486_v2 = vrot.slane %v15485_v52, 2  ;;  %v15491_v17 = vrot.slane %v15490_v38, 4  ;;  %17120 = vmatpush3.msra.mxu0 %v19164_v63  ;;  %17121 = vmatprep.mubr.msk.f32.mxu0 %vm17710_vm2, %v17709_v9 }
 0x52d   :  { %v15083_v42 = vand.u32 4294901760, %v15082_v57  ;;  %p17684_p5 = por %p17683_p4, %p17682_p3 }
 0x52e   :  { %v15487_v58 = vadd.f32 %v15486_v2, %v15485_v52  ;;  %v15492_v8 = vadd.f32 %v15491_v17, %v15490_v38 }
 0x52f   :  { %17092 = vmatmul.mubr.f32.vlgmr.msra.gmra.mrb[32].mxu1 %v19183_v41  ;;  %v15084_v59 = vsub.f32 %v15082_v57, %v15083_v42  ;;  %p17685_p6 = pnand %p17684_p5, %p17678_p2 }
 0x530   :  { %v15488_v40 = vrot.slane %v15487_v58, 1  ;;  %v15493_v60 = vrot.slane %v15492_v8, 2  ;;  %17125 = vmatpush3.msra.mxu1 %v19247_v18  ;;  %17126 = vmatprep.mubr.msk.f32.mxu1 %vm17710_vm2, %v17709_v9 }
 0x531   :  { %v15085_v4 = vand.u32 4294901760, %v15084_v59  ;;  %17129 = vmatprep.subr.mxu1 %v17709_v9 }
 0x532   :  { %v15489_v63 = vadd.f32 %v15488_v40, %v15487_v58  ;;  %v15494_v0 = vadd.f32 %v15493_v60, %v15492_v8 }
 0x533   :  { %17122 = vmatmul.mubr.f32.vlgmr.msra.gmra.mrb[34].mxu0 %v19200_v20  ;;  %17127 = vmatmul.mubr.f32.vlgmr.msra.gmra.mrb[34].mxu1 %v15085_v4 }
 0x534   :  { %v15595_v1 = vsel %vm15594_vm8, %v15489_v63, %v19213_v31  ;;  %v15495_v3 = vrot.slane %v15494_v0, 1  ;;  %17130 = vmatpush3.msra.mxu1 %v15096_v62  ;;  %17131 = vmatprep.mubr.msk.f32.mxu1 %vm17710_vm2, %v17709_v9 }
 0x535   :  { %17134 = vmatprep.subr.mxu1 %v17709_v9 }
 0x536   :  { %v15496_v5 = vadd.f32 %v15495_v3, %v15494_v0 }
 0x538   :  { %v15597_v6 = vsel %vm15596_vm9, %v15496_v5, %v15595_v1 }
 0x53b   :  { %17132 = vmatmul.mubr.f32.vlgmr.msra.gmra.mrb[34].mxu1 %v19265_v50 }
 0x53c   :  { %17135 = vmatpush3.msra.mxu1 %v15093_v28  ;;  %17136 = vmatprep.mubr.msk.f32.mxu1 %vm17710_vm2, %v17709_v9 }
 0x53d   :  { %17139 = vmatprep.subr.mxu1 %v17709_v9 }
 0x543   :  { %17137 = vmatmul.mubr.f32.vlgmr.msra.gmra.mrb[34].mxu1 %v15082_v57 }
 0x544   :  { %17140 = vmatpush3.msra.mxu1 %v19247_v18  ;;  %17141 = vmatprep.mubr.msk.f32.mxu1 %vm17710_vm2, %v17709_v9 }
 0x545   :  { %17144 = vmatprep.subr.mxu1 %v17709_v9 }
 0x54b   :  { %17142 = vmatmul.mubr.f32.vlgmr.msra.gmra.mrb[34].mxu1 %v15083_v42 }
 0x54c   :  { %17145 = vmatpush3.msra.mxu1 %v15094_v36  ;;  %17146 = vmatprep.mubr.msk.f32.mxu1 %vm17710_vm2, %v17709_v9 }
 0x54d   :  { %17149 = vmatprep.subr.mxu1 %v17709_v9 }
 0x552   :  { %v10967_v33 = vpop.f32.mrb[24].mxu1 }
 0x553   :  { %v15497_v7 = vsel %vm15461_vm5, %v10967_v33, 0.0  ;;  %v16853_v45 = vpop.f32.mrb[25].mxu1  ;;  %17147 = vmatmul.mubr.f32.vlgmr.msra.gmra.mrb[34].mxu1 %v19265_v50 }
 0x554   :  { %v15498_v11 = vrot.slane %v15497_v7, 4  ;;  %17150 = vmatpush3.msra.mxu1 %v19247_v18  ;;  %17151 = vmatprep.mubr.msk.f32.mxu1 %vm17710_vm2, %v17709_v9 }
 0x556   :  { %v15499_v12 = vadd.f32 %v15498_v11, %v15497_v7  ;;  %v11416_v41 = vpop.f32.mrb[26].mxu0 }
 0x557   :  { %v15504_v47 = vsel %vm15461_vm5, %v11416_v41, 0.0  ;;  %v16883_v14 = vpop.f32.mrb[27].mxu0 }
 0x558   :  { %v15500_v13 = vrot.slane %v15499_v12, 2  ;;  %v15505_v15 = vrot.slane %v15504_v47, 4 }
 0x55a   :  { %v15501_v19 = vadd.f32 %v15500_v13, %v15499_v12  ;;  %v15506_v61 = vadd.f32 %v15505_v15, %v15504_v47 }
 0x55b   :  { %17152 = vmatmul.mubr.f32.vlgmr.msra.gmra.mrb[34].mxu1 %v19265_v50 }
 0x55c   :  { %v15502_v55 = vrot.slane %v15501_v19, 1  ;;  %v15507_v20 = vrot.slane %v15506_v61, 2 }
 0x55e   :  { %v15503_v24 = vadd.f32 %v15502_v55, %v15501_v19  ;;  %v15508_v21 = vadd.f32 %v15507_v20, %v15506_v61 }
 0x560   :  { %v15599_v23 = vsel %vm15598_vm10, %v15503_v24, %v15597_v6  ;;  %v15509_v56 = vrot.slane %v15508_v21, 1 }
 0x562   :  { %v15510_v9 = vadd.f32 %v15509_v56, %v15508_v21 }
 0x564   :  { %v15601_v54 = vsel %vm15600_vm11, %v15510_v9, %v15599_v23 }
 0x57e   :  { %v11865_v25 = vpop.f32.mrb[26].mxu1 }
 0x57f   :  { %v15511_v26 = vsel %vm15461_vm5, %v11865_v25, 0.0  ;;  %v16913_v27 = vpop.f32.mrb[27].mxu1 }
 0x580   :  { %v15512_v16 = vrot.slane %v15511_v26, 4 }
 0x582   :  { %v15513_v29 = vadd.f32 %v15512_v16, %v15511_v26  ;;  %v12314_v10 = vpop.f32.mrb[28].mxu0 }
 0x583   :  { %v16943_v31 = vpop.f32.mrb[29].mxu0  ;;  %v15518_v28 = vsel %vm15461_vm5, %v12314_v10, 0.0 }
 0x584   :  { %v15514_v32 = vrot.slane %v15513_v29, 2  ;;  %v15519_v34 = vrot.slane %v15518_v28, 4 }
 0x586   :  { %v15515_v35 = vadd.f32 %v15514_v32, %v15513_v29  ;;  %v15520_v39 = vadd.f32 %v15519_v34, %v15518_v28 }
 0x588   :  { %v15516_v30 = vrot.slane %v15515_v35, 1  ;;  %v15521_v44 = vrot.slane %v15520_v39, 2 }
 0x58a   :  { %v15517_v22 = vadd.f32 %v15516_v30, %v15515_v35  ;;  %v15522_v36 = vadd.f32 %v15521_v44, %v15520_v39 }
 0x58c   :  { %v15603_v18 = vsel %vm15602_vm12, %v15517_v22, %v15601_v54  ;;  %v15523_v2 = vrot.slane %v15522_v36, 1 }
 0x58d   :  { %15613 = vst.msk [vmem:[#allocation7] sm:$0xff] %vm882_vm1, %v15603_v18 }
 0x58e   :  { %v15524_v8 = vadd.f32 %v15523_v2, %v15522_v36 }
 0x5aa   :  { %v12763_v46 = vpop.f32.mrb[28].mxu1 }
 0x5ab   :  { %v15525_v37 = vsel %vm15461_vm5, %v12763_v46, 0.0  ;;  %v16973_v49 = vpop.f32.mrb[29].mxu1 }
 0x5ac   :  { %v15526_v48 = vrot.slane %v15525_v37, 4 }
 0x5ae   :  { %v15527_v50 = vadd.f32 %v15526_v48, %v15525_v37  ;;  %v13212_v52 = vpop.f32.mrb[30].mxu0 }
 0x5af   :  { %v15532_v43 = vsel %vm15461_vm5, %v13212_v52, 0.0  ;;  %v17003_v38 = vpop.f32.mrb[31].mxu0 }
 0x5b0   :  { %v15528_v51 = vrot.slane %v15527_v50, 2  ;;  %v15533_v57 = vrot.slane %v15532_v43, 4 }
 0x5b2   :  { %v15529_v17 = vadd.f32 %v15528_v51, %v15527_v50  ;;  %v15534_v53 = vadd.f32 %v15533_v57, %v15532_v43 }
 0x5b4   :  { %v15530_v42 = vrot.slane %v15529_v17, 1  ;;  %v15535_v58 = vrot.slane %v15534_v53, 2 }
 0x5b6   :  { %v15531_v59 = vadd.f32 %v15530_v42, %v15529_v17  ;;  %v15536_v40 = vadd.f32 %v15535_v58, %v15534_v53 }
 0x5b8   :  { %v15604_v60 = vsel %vm15590_vm6, %v15531_v59, %v15524_v8  ;;  %v15537_v62 = vrot.slane %v15536_v40, 1 }
 0x5ba   :  { %v15538_v4 = vadd.f32 %v15537_v62, %v15536_v40 }
 0x5bc   :  { %v15605_v63 = vsel %vm15592_vm7, %v15538_v4, %v15604_v60 }
 0x5d6   :  { %v13661_v0 = vpop.f32.mrb[30].mxu1 }
 0x5d7   :  { %v15539_v1 = vsel %vm15461_vm5, %v13661_v0, 0.0  ;;  %v17033_v3 = vpop.f32.mrb[31].mxu1 }
 0x5d8   :  { %v15540_v5 = vrot.slane %v15539_v1, 4 }
 0x5da   :  { %v15541_v6 = vadd.f32 %v15540_v5, %v15539_v1  ;;  %v14110_v33 = vpop.f32.mrb[32].mxu0 }
 0x5db   :  { %v15546_v7 = vsel %vm15461_vm5, %v14110_v33, 0.0  ;;  %v17063_v45 = vpop.f32.mrb[33].mxu0 }
 0x5dc   :  { %v15542_v11 = vrot.slane %v15541_v6, 2  ;;  %v15547_v12 = vrot.slane %v15546_v7, 4 }
 0x5de   :  { %v15543_v41 = vadd.f32 %v15542_v11, %v15541_v6  ;;  %v15548_v47 = vadd.f32 %v15547_v12, %v15546_v7 }
 0x5e0   :  { %v15544_v14 = vrot.slane %v15543_v41, 1  ;;  %v15549_v13 = vrot.slane %v15548_v47, 2 }
 0x5e2   :  { %v15545_v15 = vadd.f32 %v15544_v14, %v15543_v41  ;;  %v15550_v19 = vadd.f32 %v15549_v13, %v15548_v47 }
 0x5e4   :  { %v15606_v61 = vsel %vm15594_vm8, %v15545_v15, %v15605_v63  ;;  %v15551_v55 = vrot.slane %v15550_v19, 1 }
 0x5e6   :  { %v15552_v20 = vadd.f32 %v15551_v55, %v15550_v19 }
 0x5e8   :  { %v15607_v24 = vsel %vm15596_vm9, %v15552_v20, %v15606_v61 }
 0x602   :  { %v14559_v21 = vpop.f32.mrb[32].mxu1 }
 0x603   :  { %v15553_v23 = vsel %vm15461_vm5, %v14559_v21, 0.0  ;;  %v17093_v56 = vpop.f32.mrb[33].mxu1 }
 0x604   :  { %v15554_v9 = vrot.slane %v15553_v23, 4 }
 0x606   :  { %v15555_v54 = vadd.f32 %v15554_v9, %v15553_v23  ;;  %v15008_v25 = vpop.f32.mrb[34].mxu0 }
 0x607   :  { %v15560_v26 = vsel %vm15461_vm5, %v15008_v25, 0.0  ;;  %v17123_v27 = vpop.f32.mrb[35].mxu0 }
 0x608   :  { %v15556_v16 = vrot.slane %v15555_v54, 2  ;;  %v15561_v29 = vrot.slane %v15560_v26, 4 }
 0x60a   :  { %v15557_v10 = vadd.f32 %v15556_v16, %v15555_v54  ;;  %v15562_v31 = vadd.f32 %v15561_v29, %v15560_v26 }
 0x60c   :  { %v15558_v32 = vrot.slane %v15557_v10, 1  ;;  %v15563_v35 = vrot.slane %v15562_v31, 2 }
 0x60e   :  { %v15559_v30 = vadd.f32 %v15558_v32, %v15557_v10  ;;  %v15564_v22 = vadd.f32 %v15563_v35, %v15562_v31 }
 0x610   :  { %v15608_v18 = vsel %vm15598_vm10, %v15559_v30, %v15607_v24  ;;  %v15565_v28 = vrot.slane %v15564_v22, 1 }
 0x612   :  { %v15566_v34 = vadd.f32 %v15565_v28, %v15564_v22 }
 0x614   :  { %v15609_v39 = vsel %vm15600_vm11, %v15566_v34, %v15608_v18 }
 0x62e   :  { %v15457_v44 = vpop.f32.mrb[34].mxu1 }
 0x62f   :  { %v15567_v46 = vsel %vm15461_vm5, %v15457_v44, 0.0  ;;  %v17153_v37 = vpop.f32.mrb[35].mxu1 }
 0x630   :  { %v15568_v49 = vrot.slane %v15567_v46, 4 }
 0x632   :  { %v15569_v48 = vadd.f32 %v15568_v49, %v15567_v46 }
 0x634   :  { %v15570_v36 = vrot.slane %v15569_v48, 2 }
 0x636   :  { %v15571_v50 = vadd.f32 %v15570_v36, %v15569_v48 }
 0x638   :  { %v15572_v52 = vrot.slane %v15571_v50, 1 }
 0x63a   :  { %v15573_v43 = vadd.f32 %v15572_v52, %v15571_v50 }
 0x63c   :  { %v15610_v38 = vsel %vm15602_vm12, %v15573_v43, %v15609_v39 }
 0x63d   :  { %15614 = vst.msk [vmem:[#allocation7 + $0x8] sm:$0xff] %vm882_vm1, %v15610_v38 }
 0x63e   :  { %17688 = shalt.err (!%p17685_p6)
}
 0x63f   :  { %s17689_s7 = scalar_lea.hbm %s19344_s4, 256 }
 0x640   :  { %p17690_p7 = scmp.ne.s32.totalorder %s19344_s4, %s17689_s7  ;;  %p17693_p8 = scmp.lt.u32.totalorder %s17689_s7, %s19344_s4 }
 0x642   :  { %p17695_p9 = pnand %p17693_p8, %p17690_p7 }
 0x644   :  { %17698 = shalt.err (!%p17695_p9)
}
 0x645   :  { %15642 = dma.vmem_to_hbm [thread:$0]  %s15637_s26, 256, %s19344_s4, [#allocation4], %s17706_s28, %s17706_s28, %s17707_s29  }
 0x646   :  { %17703 = dma.done.wait [#allocation4], 256  }
 0x647   :  { %17704 = vsyncadd [#allocation4], 4294967040 }
 0x648   :  { %15650 = vsyncpa [#allocation3], 1 }
 0x649   :  { %15651 = vsyncpa [#allocation6], 1 }
 0x64a   :  { %15652 = vsyncpa [#allocation4], 1 }

</bundles_post_ra>
